<compile_context>
chip_gen: v7x
topology: tpu7x:2x2x1
jax: 0.10.0
libtpu: 0.0.40
codegen_flags: <defaults>
</compile_context>

<pallas_src>
import functools

import jax
import jax.numpy as jnp
from jax import lax
from jax.experimental import pallas as pl
from jax.experimental.pallas import tpu as pltpu


def _sepconv_kernel(x_ref, wdw_ref, wpw_ref, o_ref, *, K, TH, Wo, C, Cout):
    # x_ref  : (1, H, W, C)        full NHWC image for this batch element (resident over h)
    # wdw_ref: (K*K, C)            lane-dense depthwise taps
    # wpw_ref: (C, Cout)           pointwise weight, contraction-ready
    # o_ref  : (1, TH, Wo, Cout)   lane-dense output tile (Cout on lanes)
    h = pl.program_id(1)
    row0 = h * TH

    # Load (and cast) the rows this tile needs exactly once; accumulate depthwise in f32.
    xt = x_ref[0, pl.ds(row0, TH + K - 1), :, :].astype(jnp.float32)   # (TH+K-1, W, C)
    wdw = wdw_ref[...].astype(jnp.float32)                             # (K*K, C)

    # Depthwise conv: shift-and-accumulate over the K*K taps.  With C on lanes the
    # ky/kx shifts are sublane/row offsets only (no cross-lane data movement).
    dw = jnp.zeros((TH, Wo, C), dtype=jnp.float32)
    for ky in range(K):
        for kx in range(K):
            patch = xt[ky:ky + TH, kx:kx + Wo, :]                      # (TH, Wo, C)
            t = ky * K + kx
            wt = wdw[t:t + 1, :].reshape(1, 1, C)                      # lane-dense tap row
            dw = dw + patch * wt

    # Pointwise 1x1 conv on the MXU: (TH*Wo, C) @ (C, Cout), bf16 in / f32 accumulate.
    m = dw.reshape(TH * Wo, C).astype(jnp.bfloat16)
    wpw = wpw_ref[...].astype(jnp.bfloat16)
    out = jnp.dot(m, wpw, preferred_element_type=jnp.float32)          # (TH*Wo, Cout)

    o_ref[0] = out.reshape(TH, Wo, Cout).astype(o_ref.dtype)


def seperable_conv2d(x, w_depthwise, w_pointwise, *, target_tile_bytes=2 * 1024 * 1024):
    """Forward pass of Xception SeperableConv2d.

    x           : (N, C, H, W)      NCHW (PyTorch layout)
    w_depthwise : (C, 1, K, K)      PyTorch depthwise weight
    w_pointwise : (Cout, C, 1, 1)   PyTorch pointwise weight
    returns     : (N, Cout, Ho, Wo) NCHW
    """
    N, C, H, W = x.shape
    K = w_depthwise.shape[-1]
    Cout = w_pointwise.shape[0]
    Ho, Wo = H - K + 1, W - K + 1
    # TODO(synk): only the PyTorch-default depthwise config (stride=1, padding=0) is
    # implemented; non-default stride/padding kwargs are not handled here.

    # Channels-last layout plumbing (outside the kernel).
    x_nhwc = jnp.transpose(x, (0, 2, 3, 1))                            # (N, H, W, C)
    wdw = jnp.transpose(w_depthwise.reshape(C, K * K), (1, 0))         # (K*K, C)
    wpw = jnp.transpose(w_pointwise.reshape(Cout, C), (1, 0))          # (C, Cout)

    # Output-row tiling: largest divisor of Ho whose f32 per-tile footprint
    # (depthwise accumulator + output tile) stays within ~target_tile_bytes.
    row_bytes = max(Wo * (C + Cout) * 4, 1)
    rows_cap = max(1, target_tile_bytes // row_bytes)
    TH = 1
    for d in range(1, Ho + 1):
        if Ho % d == 0 and d <= rows_cap:
            TH = d
    nH = Ho // TH

    kernel = functools.partial(_sepconv_kernel, K=K, TH=TH, Wo=Wo, C=C, Cout=Cout)

    out_nhwc = pl.pallas_call(
        kernel,
        out_shape=jax.ShapeDtypeStruct((N, Ho, Wo, Cout), x.dtype),
        grid_spec=pltpu.PrefetchScalarGridSpec(
            num_scalar_prefetch=0,
            grid=(N, nH),
            in_specs=[
                # Full image block; index_map ignores h so it stays resident (one DMA per n).
                pl.BlockSpec((1, H, W, C), lambda n, h: (n, 0, 0, 0)),
                pl.BlockSpec((K * K, C), lambda n, h: (0, 0)),
                pl.BlockSpec((C, Cout), lambda n, h: (0, 0)),
            ],
            out_specs=pl.BlockSpec((1, TH, Wo, Cout), lambda n, h: (n, h, 0, 0)),
        ),
        compiler_params=pltpu.CompilerParams(
            dimension_semantics=("parallel", "parallel"),
            vmem_limit_bytes=48 * 1024 * 1024,
        ),
    )(x_nhwc, wdw, wpw)

    return jnp.transpose(out_nhwc, (0, 3, 1, 2))                       # (N, Cout, Ho, Wo)


def _reference(x, w_depthwise, w_pointwise):
    # Pure-JAX f32 reference using lax.conv_general_dilated (NCHW / OIHW).
    C = x.shape[1]
    dw = lax.conv_general_dilated(
        x, w_depthwise, window_strides=(1, 1), padding="VALID",
        dimension_numbers=("NCHW", "OIHW", "NCHW"),
        feature_group_count=C,
    )
    pw = lax.conv_general_dilated(
        dw, w_pointwise, window_strides=(1, 1), padding="VALID",
        dimension_numbers=("NCHW", "OIHW", "NCHW"),
    )
    return pw


if __name__ == "__main__":
    key = jax.random.PRNGKey(0)
    kx, kd, kp = jax.random.split(key, 3)

    N, Cin, Cout, H, W, K = 2, 4, 8, 16, 16, 3

    x = jax.random.normal(kx, (N, Cin, H, W), dtype=jnp.float32)
    w_dw = jax.random.normal(kd, (Cin, 1, K, K), dtype=jnp.float32) * 0.1
    w_pw = jax.random.normal(kp, (Cout, Cin, 1, 1), dtype=jnp.float32) * 0.1

    out = seperable_conv2d(x, w_dw, w_pw)
    out = jax.block_until_ready(out)

    ref = _reference(x, w_dw, w_pw)
    assert out.shape == ref.shape, (out.shape, ref.shape)
    # Tolerance accounts for bf16 MXU inputs (f32 accumulation) in the pointwise matmul.
    assert jnp.allclose(out, ref, atol=3e-2, rtol=3e-2), "mismatch vs reference conv"

    print("KERNEL_OK")
</pallas_src>

<mosaic_0001>
module attributes {stable_mosaic.version = 11 : i64} {
  func.func @_sepconv_kernel(%arg0: i32, %arg1: i32, %arg2: memref<1x16x16x4xf32, #tpu.memory_space<vmem>>, %arg3: memref<9x4xf32, #tpu.memory_space<vmem>>, %arg4: memref<4x8xf32, #tpu.memory_space<vmem>>, %arg5: memref<1x14x14x8xf32, #tpu.memory_space<vmem>>) attributes {dimension_semantics = [#tpu.dimension_semantics<parallel>, #tpu.dimension_semantics<parallel>], iteration_bounds = array<i64: 2, 1>, scalar_prefetch = 0 : i64, scratch_operands = 0 : i64, tpu.core_type = #tpu.core_type<tc>, window_params = [{transform_indices = @transform_0, window_bounds = array<i64: 1, 16, 16, 4>}, {pipeline_mode = #tpu.pipeline_mode<synchronous>, transform_indices = @transform_1, window_bounds = array<i64: 9, 4>}, {pipeline_mode = #tpu.pipeline_mode<synchronous>, transform_indices = @transform_2, window_bounds = array<i64: 4, 8>}, {transform_indices = @transform_3, window_bounds = array<i64: 1, 14, 14, 8>}]} {
    %c14_i32 = arith.constant 14 : i32
    %0 = arith.muli %arg1, %c14_i32 : i32
    %c0 = arith.constant 0 : index
    %1 = arith.index_cast %0 : i32 to index
    %c0_0 = arith.constant 0 : index
    %c0_1 = arith.constant 0 : index
    %2 = vector.load %arg2[%c0, %1, %c0_0, %c0_1] : memref<1x16x16x4xf32, #tpu.memory_space<vmem>>, vector<1x16x16x4xf32>
    %3 = vector.shape_cast %2 : vector<1x16x16x4xf32> to vector<16x16x4xf32>
    %c0_2 = arith.constant 0 : index
    %c0_3 = arith.constant 0 : index
    %4 = vector.load %arg3[%c0_2, %c0_3] : memref<9x4xf32, #tpu.memory_space<vmem>>, vector<9x4xf32>
    %cst = arith.constant 0.000000e+00 : f32
    %5 = vector.broadcast %cst : f32 to vector<14x14x4xf32>
    %6 = vector.extract_strided_slice %3 {offsets = [0, 0, 0], sizes = [14, 14, 4], strides = [1, 1, 1]} : vector<16x16x4xf32> to vector<14x14x4xf32>
    %7 = vector.extract_strided_slice %4 {offsets = [0, 0], sizes = [1, 4], strides = [1, 1]} : vector<9x4xf32> to vector<1x4xf32>
    %8 = vector.shape_cast %7 : vector<1x4xf32> to vector<1x1x4xf32>
    %9 = vector.broadcast %8 : vector<1x1x4xf32> to vector<14x14x4xf32>
    %10 = arith.mulf %6, %9 : vector<14x14x4xf32>
    %11 = arith.addf %5, %10 : vector<14x14x4xf32>
    %12 = vector.extract_strided_slice %3 {offsets = [0, 1, 0], sizes = [14, 14, 4], strides = [1, 1, 1]} : vector<16x16x4xf32> to vector<14x14x4xf32>
    %13 = vector.extract_strided_slice %4 {offsets = [1, 0], sizes = [1, 4], strides = [1, 1]} : vector<9x4xf32> to vector<1x4xf32>
    %14 = vector.shape_cast %13 : vector<1x4xf32> to vector<1x1x4xf32>
    %15 = vector.broadcast %14 : vector<1x1x4xf32> to vector<14x14x4xf32>
    %16 = arith.mulf %12, %15 : vector<14x14x4xf32>
    %17 = arith.addf %11, %16 : vector<14x14x4xf32>
    %18 = vector.extract_strided_slice %3 {offsets = [0, 2, 0], sizes = [14, 14, 4], strides = [1, 1, 1]} : vector<16x16x4xf32> to vector<14x14x4xf32>
    %19 = vector.extract_strided_slice %4 {offsets = [2, 0], sizes = [1, 4], strides = [1, 1]} : vector<9x4xf32> to vector<1x4xf32>
    %20 = vector.shape_cast %19 : vector<1x4xf32> to vector<1x1x4xf32>
    %21 = vector.broadcast %20 : vector<1x1x4xf32> to vector<14x14x4xf32>
    %22 = arith.mulf %18, %21 : vector<14x14x4xf32>
    %23 = arith.addf %17, %22 : vector<14x14x4xf32>
    %24 = vector.extract_strided_slice %3 {offsets = [1, 0, 0], sizes = [14, 14, 4], strides = [1, 1, 1]} : vector<16x16x4xf32> to vector<14x14x4xf32>
    %25 = vector.extract_strided_slice %4 {offsets = [3, 0], sizes = [1, 4], strides = [1, 1]} : vector<9x4xf32> to vector<1x4xf32>
    %26 = vector.shape_cast %25 : vector<1x4xf32> to vector<1x1x4xf32>
    %27 = vector.broadcast %26 : vector<1x1x4xf32> to vector<14x14x4xf32>
    %28 = arith.mulf %24, %27 : vector<14x14x4xf32>
    %29 = arith.addf %23, %28 : vector<14x14x4xf32>
    %30 = vector.extract_strided_slice %3 {offsets = [1, 1, 0], sizes = [14, 14, 4], strides = [1, 1, 1]} : vector<16x16x4xf32> to vector<14x14x4xf32>
    %31 = vector.extract_strided_slice %4 {offsets = [4, 0], sizes = [1, 4], strides = [1, 1]} : vector<9x4xf32> to vector<1x4xf32>
    %32 = vector.shape_cast %31 : vector<1x4xf32> to vector<1x1x4xf32>
    %33 = vector.broadcast %32 : vector<1x1x4xf32> to vector<14x14x4xf32>
    %34 = arith.mulf %30, %33 : vector<14x14x4xf32>
    %35 = arith.addf %29, %34 : vector<14x14x4xf32>
    %36 = vector.extract_strided_slice %3 {offsets = [1, 2, 0], sizes = [14, 14, 4], strides = [1, 1, 1]} : vector<16x16x4xf32> to vector<14x14x4xf32>
    %37 = vector.extract_strided_slice %4 {offsets = [5, 0], sizes = [1, 4], strides = [1, 1]} : vector<9x4xf32> to vector<1x4xf32>
    %38 = vector.shape_cast %37 : vector<1x4xf32> to vector<1x1x4xf32>
    %39 = vector.broadcast %38 : vector<1x1x4xf32> to vector<14x14x4xf32>
    %40 = arith.mulf %36, %39 : vector<14x14x4xf32>
    %41 = arith.addf %35, %40 : vector<14x14x4xf32>
    %42 = vector.extract_strided_slice %3 {offsets = [2, 0, 0], sizes = [14, 14, 4], strides = [1, 1, 1]} : vector<16x16x4xf32> to vector<14x14x4xf32>
    %43 = vector.extract_strided_slice %4 {offsets = [6, 0], sizes = [1, 4], strides = [1, 1]} : vector<9x4xf32> to vector<1x4xf32>
    %44 = vector.shape_cast %43 : vector<1x4xf32> to vector<1x1x4xf32>
    %45 = vector.broadcast %44 : vector<1x1x4xf32> to vector<14x14x4xf32>
    %46 = arith.mulf %42, %45 : vector<14x14x4xf32>
    %47 = arith.addf %41, %46 : vector<14x14x4xf32>
    %48 = vector.extract_strided_slice %3 {offsets = [2, 1, 0], sizes = [14, 14, 4], strides = [1, 1, 1]} : vector<16x16x4xf32> to vector<14x14x4xf32>
    %49 = vector.extract_strided_slice %4 {offsets = [7, 0], sizes = [1, 4], strides = [1, 1]} : vector<9x4xf32> to vector<1x4xf32>
    %50 = vector.shape_cast %49 : vector<1x4xf32> to vector<1x1x4xf32>
    %51 = vector.broadcast %50 : vector<1x1x4xf32> to vector<14x14x4xf32>
    %52 = arith.mulf %48, %51 : vector<14x14x4xf32>
    %53 = arith.addf %47, %52 : vector<14x14x4xf32>
    %54 = vector.extract_strided_slice %3 {offsets = [2, 2, 0], sizes = [14, 14, 4], strides = [1, 1, 1]} : vector<16x16x4xf32> to vector<14x14x4xf32>
    %55 = vector.extract_strided_slice %4 {offsets = [8, 0], sizes = [1, 4], strides = [1, 1]} : vector<9x4xf32> to vector<1x4xf32>
    %56 = vector.shape_cast %55 : vector<1x4xf32> to vector<1x1x4xf32>
    %57 = vector.broadcast %56 : vector<1x1x4xf32> to vector<14x14x4xf32>
    %58 = arith.mulf %54, %57 : vector<14x14x4xf32>
    %59 = arith.addf %53, %58 : vector<14x14x4xf32>
    %60 = vector.shape_cast %59 : vector<14x14x4xf32> to vector<196x4xf32>
    %61 = arith.truncf %60 : vector<196x4xf32> to vector<196x4xbf16>
    %c0_4 = arith.constant 0 : index
    %c0_5 = arith.constant 0 : index
    %62 = vector.load %arg4[%c0_4, %c0_5] : memref<4x8xf32, #tpu.memory_space<vmem>>, vector<4x8xf32>
    %63 = arith.truncf %62 : vector<4x8xf32> to vector<4x8xbf16>
    %cst_6 = arith.constant dense<0.000000e+00> : vector<196x8xf32>
    %64 = tpu.matmul %61, %63, %cst_6 {dimension_numbers = #tpu.dot_dimension_numbers<[1], [0], [0], [1], [0, 0, 1, 1], [], []>} : vector<196x4xbf16>, vector<4x8xbf16>, vector<196x8xf32> -> vector<196x8xf32>
    %65 = vector.shape_cast %64 : vector<196x8xf32> to vector<14x14x8xf32>
    %c0_7 = arith.constant 0 : index
    %c0_8 = arith.constant 0 : index
    %c0_9 = arith.constant 0 : index
    %c0_10 = arith.constant 0 : index
    %66 = vector.load %arg5[%c0_7, %c0_8, %c0_9, %c0_10] : memref<1x14x14x8xf32, #tpu.memory_space<vmem>>, vector<1x14x14x8xf32>
    %67 = vector.shape_cast %66 : vector<1x14x14x8xf32> to vector<14x14x8xf32>
    %68 = vector.shape_cast %65 : vector<14x14x8xf32> to vector<1x14x14x8xf32>
    tpu.vector_store %arg5[%c0_7, %c0_8, %c0_9, %c0_10], %68 {strides = array<i32>} : memref<1x14x14x8xf32, #tpu.memory_space<vmem>>, vector<1x14x14x8xf32>,
    return
  }
  func.func @transform_0(%arg0: i32, %arg1: i32) -> (i32, i32, i32, i32) {
    %c0_i32 = arith.constant 0 : i32
    %c0_i32_0 = arith.constant 0 : i32
    %c0_i32_1 = arith.constant 0 : i32
    %c0_i32_2 = arith.constant 0 : i32
    return %arg0, %c0_i32, %c0_i32_0, %c0_i32_1 : i32, i32, i32, i32
  }
  func.func @transform_1(%arg0: i32, %arg1: i32) -> (i32, i32) {
    %c0_i32 = arith.constant 0 : i32
    %c0_i32_0 = arith.constant 0 : i32
    %c0_i32_1 = arith.constant 0 : i32
    return %c0_i32, %c0_i32_0 : i32, i32
  }
  func.func @transform_2(%arg0: i32, %arg1: i32) -> (i32, i32) {
    %c0_i32 = arith.constant 0 : i32
    %c0_i32_0 = arith.constant 0 : i32
    %c0_i32_1 = arith.constant 0 : i32
    return %c0_i32, %c0_i32_0 : i32, i32
  }
  func.func @transform_3(%arg0: i32, %arg1: i32) -> (i32, i32, i32, i32) {
    %c0_i32 = arith.constant 0 : i32
    %c0_i32_0 = arith.constant 0 : i32
    %c0_i32_1 = arith.constant 0 : i32
    return %arg0, %arg1, %c0_i32, %c0_i32_0 : i32, i32, i32, i32
  }
}

</mosaic_0001>

<bundles_post_ra>
// kernel: tpu_custom_call.1
= control target key start
LH: loop header
LB: loop body
LE: loop exit
PB: predicated region body
PF: predicated region fallthrough
CT: control target
= control target key end

     0   :  { %s3715_s12 = smov 0   ;;  %s3717_s13 = smov 0   ;;  %s5160_s0 = inlined_call_operand.vmem [shape: f32[2,16,16,4], index: 0, kind: input, shape index: {}]   ;;  %s5161_s1 = inlined_call_operand.vmem [shape: f32[9,4], index: 1, kind: input, shape index: {}]   ;;  %s5162_s2 = inlined_call_operand.vmem [shape: f32[4,8], index: 2, kind: input, shape index: {}]   ;;  %s5163_s3 = inlined_call_operand.vmem [shape: f32[2,14,14,8], index: 3, kind: output, shape index: {}]  }
   0x1   :  { %s3719_s14 = smov 0  }
   0x2 LB: > { %s25_s15 = sadd.s32 1, %s3686_s13  ;;  %p3544_p0 = scmp.ge.s32.totalorder %s3690_s14, 1  ;;  %s3690_s14 = sphi %s3719_s14, %s13_s14   ;;  %s3686_s13 = sphi %s3717_s13, %s5199_s13   ;;  %s3682_s12 = sphi %s3715_s12, %s5198_s12  }
   0x3   : > { %p27_p1 = scmp.ge.s32.totalorder %s25_s15, 2  ;;  %p151_p2 = scmp.lt.s32.totalorder %s3690_s14, 3 }
   0x5   : > { %s5201_s15 = smov (%p27_p1, %s25_s15), 0  ;;  %p152_p3 = pnand %p3544_p0, %p151_p2 }
   0x6   : > { %v2308_v0 = vld [vmem:[%s5162_s2] sm:$0xf] (!%p152_p3)  ;;  %vm2350_vm0 = vcmask (!%p152_p3), 1041408   ;;  %p180_p4 = scmp.lt.s32.totalorder (!%p152_p3), %s3682_s12, 1  ;;  %v234_v1 = vlaneseq (!%p152_p3)  ;;  %v3692_v2 = vmov (!%p152_p3), 0.0   ;;  %vm3693_vm1 = vmmov (!%p152_p3), 0  }
   0x7   : > { %155 = sbr.rel (%p152_p3) target bundleno = 508 (0x1fc), region = 32  ;;  %3579 = vmatprep.subr.bf16.mxu0 (!%p152_p3), %v3692_v2  ;;  %v2309_v3 = vpack.c.bf16 (!%p152_p3), %v2308_v0, %v2308_v0  ;;  %3581 = vmatprep.mubr.msk.bf16.mxu0 (!%p152_p3), %vm3693_vm1, %v3692_v2  ;;  %v232_v6 = vld [vmem:[%s5161_s1] sm:$0xff] (!%p152_p3)  ;;  %vm354_vm2 = vcmask (!%p152_p3), 1046528   ;;  %vm513_vm3 = vcmask (!%p152_p3), 1045504   ;;  %v3694_v7 = vmov (!%p152_p3), 1983009808  }
   0x8   : > { %3633 = vmatprep.subr.bf16.mxu1 (!%p152_p3), %v3692_v2  ;;  %v3742_v4 = vshrl.u32 (!%p152_p3), %v234_v1, 7  ;;  %3609 = vmatprep.mubr.msk.bf16.mxu1 (!%p152_p3), %vm3693_vm1, %v3692_v2  ;;  %v3749_v8 = vunpack.c.l.s4 (!%p152_p3), %v3694_v7  ;;  %vm2310_vm4 = vcmask (!%p152_p3), 31744   ;;  %vm3421_vm5 = vcmask (!%p152_p3), 64512  }
   0x9   : > { %v2352_v5 = vsel (!%p152_p3), %vm2350_vm0, %v2309_v3, 0  ;;  %vm3423_vm6 = vcmask (!%p152_p3), 62464  }
   0xa   : > { %3580 = vmatpush3.bf16.msra.mxu0 (!%p152_p3), %v2352_v5  ;;  %v236_v9 = vsub.s32 (!%p152_p3), 0, %v3742_v4  ;;  %v296_v10 = vsub.s32 (!%p152_p3), 1, %v3742_v4  ;;  %v455_v11 = vsub.s32 (!%p152_p3), 2, %v3742_v4  ;;  %v614_v12 = vsub.s32 (!%p152_p3), 3, %v3742_v4  ;;  %3634 = vmatpush3.bf16.msra.mxu1 (!%p152_p3), %v2352_v5 }
   0xb   : > { %v674_v13 = vsub.s32 (!%p152_p3), 4, %v3742_v4  ;;  %v832_v14 = vsub.s32 (!%p152_p3), 5, %v3742_v4  ;;  %v990_v15 = vsub.s32 (!%p152_p3), 6, %v3742_v4  ;;  %v1050_v16 = vsub.s32 (!%p152_p3), 7, %v3742_v4 }
   0xc   : > { %v3768_v20 = vrot.slane (!%p152_p3), %v232_v6, %v236_v9  ;;  %v3770_v21 = vrot.slane (!%p152_p3), %v232_v6, %v296_v10  ;;  %v3772_v22 = vrot.slane (!%p152_p3), %v232_v6, %v455_v11  ;;  %v3774_v23 = vrot.slane (!%p152_p3), %v232_v6, %v614_v12 }
   0xd   : > { %v3779_v25 = vrot.slane (!%p152_p3), %v232_v6, %v674_v13  ;;  %v3781_v26 = vrot.slane (!%p152_p3), %v232_v6, %v832_v14  ;;  %v3783_v27 = vrot.slane (!%p152_p3), %v232_v6, %v990_v15  ;;  %v3785_v28 = vrot.slane (!%p152_p3), %v232_v6, %v1050_v16 }
   0xe   : > { %s5203_s12 = smov (!%p180_p4, %s3682_s12), 1 }
   0xf   : > { %s3564_s20 = sshll.u32 %s5203_s12, 8  ;;  %s3635_s28 = smul.u32 224, %s5203_s12 }
  0x10   : > { %s3759_s23 = scalar_lea.vmem %s5160_s0, %s3564_s20 }
  0x11   : > { %v200_v17 = vld [vmem:[%s3759_s23] sm:$0xff]  ;;  %v201_v18 = vld [vmem:[%s3759_s23 + $0x8] sm:$0xff]  ;;  %v202_v19 = vld [vmem:[%s3759_s23 + $0x10] sm:$0xff]  ;;  %s4994_s4 = scalar_lea.vmem %s5163_s3, %s3635_s28 }
  0x12   : > { %v3777_v24 = vld [vmem:[%s3759_s23 + $0x18] sm:$0xff]  ;;  %v238_v29 = vmul.f32 %v3768_v20, %v200_v17  ;;  %v239_v30 = vmul.f32 %v3768_v20, %v201_v18  ;;  %v240_v31 = vmul.f32 %v3768_v20, %v202_v19  ;;  %v298_v32 = vmul.f32 %v3770_v21, %v200_v17  ;;  %v3806_v45 = vld [vmem:[%s3759_s23 + $0x20] sm:$0xff]  ;;  %v3811_v50 = vld [vmem:[%s3759_s23 + $0x28] sm:$0xff] }
  0x13   : > { %v299_v33 = vmul.f32 %v3770_v21, %v201_v18  ;;  %v300_v34 = vmul.f32 %v3770_v21, %v202_v19  ;;  %v3795_v35 = vmul.f32 %v3770_v21, %v3777_v24  ;;  %v457_v36 = vmul.f32 %v3772_v22, %v200_v17  ;;  %v3837_v14 = vld [vmem:[%s3759_s23 + $0x30] sm:$0xff] }
  0x14   : > { %v355_v37 = vrot.slane %v298_v32, 1  ;;  %v458_v38 = vmul.f32 %v3772_v22, %v201_v18  ;;  %v459_v39 = vmul.f32 %v3772_v22, %v202_v19  ;;  %v3802_v40 = vmul.f32 %v3772_v22, %v3777_v24  ;;  %v3852_v32 = vld [vmem:[%s3759_s23 + $0x38] sm:$0xff] }
  0x15   : > { %v356_v41 = vrot.slane %v299_v33, 1  ;;  %v358_v42 = vrot.slane %v300_v34, 1  ;;  %v359_v43 = vrot.slane %v3795_v35, 1  ;;  %v514_v44 = vrot.slane %v457_v36, 2 }
  0x16   : > { %v515_v46 = vrot.slane %v458_v38, 2  ;;  %v517_v47 = vrot.slane %v459_v39, 2  ;;  %v518_v48 = vrot.slane %v3802_v40, 2  ;;  %v616_v49 = vmul.f32 %v3774_v23, %v202_v19 }
  0x17   : > { %v357_v51 = vsel %vm354_vm2, %v355_v37, %v356_v41  ;;  %v360_v52 = vsel %vm354_vm2, %v358_v42, %v359_v43  ;;  %v426_v53 = vadd.f32 %v356_v41, %v239_v30  ;;  %v617_v54 = vmul.f32 %v3774_v23, %v3777_v24 }
  0x18   : > { %v425_v55 = vadd.f32 %v357_v51, %v238_v29  ;;  %v427_v56 = vadd.f32 %v360_v52, %v240_v31  ;;  %v516_v57 = vsel %vm513_vm3, %v514_v44, %v515_v46  ;;  %v519_v58 = vsel %vm513_vm3, %v517_v47, %v518_v48  ;;  %v3866_v44 = vld [vmem:[%s5161_s1 + $0x8] ss:$0 sm:$0xff] }
  0x19   : > { %v585_v59 = vadd.f32 %v515_v46, %v426_v53  ;;  %v618_v60 = vmul.f32 %v3774_v23, %v3806_v45  ;;  %v676_v61 = vmul.f32 %v3779_v25, %v202_v19  ;;  %v677_v62 = vmul.f32 %v3779_v25, %v3777_v24 }
  0x1a   : > { %v584_v63 = vadd.f32 %v516_v57, %v425_v55  ;;  %v586_v0 = vadd.f32 %v519_v58, %v427_v56  ;;  %v678_v1 = vmul.f32 %v3779_v25, %v3806_v45  ;;  %v3832_v3 = vmul.f32 %v3779_v25, %v3811_v50 }
  0x1b   : > { %v645_v5 = vadd.f32 %v617_v54, %v585_v59  ;;  %v732_v6 = vrot.slane %v676_v61, 1  ;;  %v733_v7 = vrot.slane %v677_v62, 1  ;;  %v834_v9 = vmul.f32 %v3781_v26, %v202_v19 }
  0x1c   : > { %v644_v10 = vadd.f32 %v616_v49, %v584_v63  ;;  %v646_v11 = vadd.f32 %v618_v60, %v586_v0  ;;  %v735_v12 = vrot.slane %v678_v1, 1  ;;  %v736_v13 = vrot.slane %v3832_v3, 1 }
  0x1d   : > { %v734_v15 = vsel %vm354_vm2, %v732_v6, %v733_v7  ;;  %v803_v16 = vadd.f32 %v733_v7, %v645_v5  ;;  %v835_v17 = vmul.f32 %v3781_v26, %v3777_v24  ;;  %v836_v18 = vmul.f32 %v3781_v26, %v3806_v45 }
  0x1e   : > { %v737_v19 = vsel %vm354_vm2, %v735_v12, %v736_v13  ;;  %v802_v29 = vadd.f32 %v734_v15, %v644_v10  ;;  %v3849_v30 = vmul.f32 %v3781_v26, %v3811_v50  ;;  %v890_v31 = vrot.slane %v834_v9, 2  ;;  %v216_v12 = vld [vmem:[%s3759_s23 + $0x80] sm:$0xff] }
  0x1f   : > { %v804_v33 = vadd.f32 %v737_v19, %v646_v11  ;;  %v891_v34 = vrot.slane %v835_v17, 2  ;;  %v893_v36 = vrot.slane %v836_v18, 2  ;;  %v992_v37 = vmul.f32 %v3783_v27, %v3806_v45  ;;  %v217_v19 = vld [vmem:[%s3759_s23 + $0x88] sm:$0xff] }
  0x20   : > { %v894_v38 = vrot.slane %v3849_v30, 2  ;;  %v993_v39 = vmul.f32 %v3783_v27, %v3811_v50  ;;  %v994_v41 = vmul.f32 %v3783_v27, %v3837_v14  ;;  %v1052_v42 = vmul.f32 %v3785_v28, %v3806_v45 }
  0x21   : > { %v892_v46 = vsel %vm513_vm3, %v890_v31, %v891_v34  ;;  %v961_v47 = vadd.f32 %v891_v34, %v803_v16  ;;  %v1053_v49 = vmul.f32 %v3785_v28, %v3811_v50  ;;  %v1054_v51 = vmul.f32 %v3785_v28, %v3837_v14 }
  0x22   : > { %v895_v52 = vsel %vm513_vm3, %v893_v36, %v894_v38  ;;  %v960_v53 = vadd.f32 %v892_v46, %v802_v29  ;;  %v3878_v54 = vmul.f32 %v3785_v28, %v3852_v32  ;;  %v1108_v55 = vrot.slane %v1052_v42, 1  ;;  %v3899_v29 = vld [vmem:[%s3759_s23 + $0x90] sm:$0xff] }
  0x23   : > { %v962_v56 = vadd.f32 %v895_v52, %v804_v33  ;;  %v1021_v57 = vadd.f32 %v993_v39, %v961_v47  ;;  %v1109_v58 = vrot.slane %v1053_v49, 1  ;;  %v1111_v59 = vrot.slane %v1054_v51, 1  ;;  %v3903_v33 = vld [vmem:[%s3759_s23 + $0x98] sm:$0xff] }
  0x24   : > { %v1020_v60 = vadd.f32 %v992_v37, %v960_v53  ;;  %v1112_v61 = vrot.slane %v3878_v54, 1  ;;  %v1210_v62 = vmul.f32 %v3866_v44, %v3806_v45  ;;  %v1211_v63 = vmul.f32 %v3866_v44, %v3811_v50 }
  0x25   : > { %v1022_v0 = vadd.f32 %v994_v41, %v962_v56  ;;  %v1110_v1 = vsel %vm354_vm2, %v1108_v55, %v1109_v58  ;;  %v1179_v5 = vadd.f32 %v1109_v58, %v1021_v57  ;;  %v1212_v6 = vmul.f32 %v3866_v44, %v3837_v14 }
  0x26   : > { %v1113_v7 = vsel %vm354_vm2, %v1111_v59, %v1112_v61  ;;  %v1178_v9 = vadd.f32 %v1110_v1, %v1020_v60  ;;  %v3893_v10 = vmul.f32 %v3866_v44, %v3852_v32  ;;  %v1266_v11 = vrot.slane %v1210_v62, 2 }
  0x27   : > { %v1180_v15 = vadd.f32 %v1113_v7, %v1022_v0  ;;  %v1267_v16 = vrot.slane %v1211_v63, 2  ;;  %v1269_v17 = vrot.slane %v1212_v6, 2  ;;  %v1395_v18 = vunpack.c.0.s8 %v3749_v8 }
  0x28   : > { %v1270_v31 = vrot.slane %v3893_v10, 2  ;;  %v254_v34 = vmul.f32 %v3768_v20, %v216_v12  ;;  %v255_v36 = vmul.f32 %v3768_v20, %v217_v19  ;;  %v256_v37 = vmul.f32 %v3768_v20, %v3899_v29 }
  0x29   : > { %v1268_v39 = vsel %vm513_vm3, %v1266_v11, %v1267_v16  ;;  %v1337_v41 = vadd.f32 %v1267_v16, %v1179_v5  ;;  %v3911_v42 = vsub.s32 %v1395_v18, %v3742_v4  ;;  %v314_v8 = vmul.f32 %v3770_v21, %v216_v12 }
  0x2a   : > { %v1271_v46 = vsel %vm513_vm3, %v1269_v17, %v1270_v31  ;;  %v1336_v47 = vadd.f32 %v1268_v39, %v1178_v9  ;;  %v315_v49 = vmul.f32 %v3770_v21, %v217_v19  ;;  %v316_v51 = vmul.f32 %v3770_v21, %v3899_v29 }
  0x2b   : > { %v3920_v52 = vadd.f32 %v1271_v46, %v1180_v15  ;;  %v1409_v53 = vcombine.high %v1337_v41, %v1337_v41  ;;  %v1416_v55 = vrot.slane %v1337_v41, %v3911_v42  ;;  %v3925_v4 = vmul.f32 %v3770_v21, %v3903_v33 }
  0x2c   : > { %v1392_v56 = vcombine.high %v1336_v47, %v1336_v47  ;;  %v1399_v57 = vrot.slane %v1336_v47, %v3911_v42  ;;  %v379_v58 = vrot.slane %v314_v8, 1  ;;  %v380_v59 = vrot.slane %v315_v49, 1 }
  0x2d   : > { %v1423_v60 = vrot.slane %v1409_v53, %v3911_v42  ;;  %v1424_v62 = vcombine.high %v1416_v55, %v1416_v55  ;;  %v3931_v63 = vrot.slane %v3920_v52, %v3911_v42  ;;  %v382_v0 = vrot.slane %v316_v51, 1 }
  0x2e   : > { %v1406_v1 = vrot.slane %v1392_v56, %v3911_v42  ;;  %v1407_v5 = vcombine.high %v1399_v57, %v1399_v57  ;;  %v381_v6 = vsel %vm354_vm2, %v379_v58, %v380_v59  ;;  %v383_v7 = vrot.slane %v3925_v4, 1  ;;  %v3958_v58 = vld [vmem:[%s3759_s23 + $0xa8] sm:$0xff] }
  0x2f   : > { %v1871_v9 = vcombine.low %v1416_v55, %v1424_v62  ;;  %v1872_v11 = vcombine.low %v1423_v60, %v3931_v63  ;;  %v441_v15 = vadd.f32 %v381_v6, %v254_v34  ;;  %v442_v16 = vadd.f32 %v380_v59, %v255_v36  ;;  %v3946_v36 = vld [vmem:[%s3759_s23 + $0xa0] sm:$0xff] }
  0x30   : > { %v1408_v17 = vcombine.high %v1406_v1, %v1406_v1  ;;  %v1854_v18 = vcombine.low %v1399_v57, %v1407_v5  ;;  %v384_v39 = vsel %vm354_vm2, %v382_v0, %v383_v7  ;;  %v473_v41 = vmul.f32 %v3772_v22, %v216_v12 }
  0x31   : > { %v1879_v8 = vrot.slane %v1871_v9, %v3911_v42  ;;  %v1886_v46 = vrot.slane %v1872_v11, %v3911_v42  ;;  %v443_v47 = vadd.f32 %v384_v39, %v256_v37  ;;  %v474_v49 = vmul.f32 %v3772_v22, %v217_v19 }
  0x32   : > { %v1855_v51 = vcombine.low %v1406_v1, %v1408_v17  ;;  %v1862_v34 = vrot.slane %v1854_v18, %v3911_v42  ;;  %v475_v53 = vmul.f32 %v3772_v22, %v3899_v29  ;;  %v3952_v55 = vmul.f32 %v3772_v22, %v3903_v33 }
  0x33   : > { %v1887_v12 = vcombine.low %v1879_v8, %v1886_v46  ;;  %v538_v56 = vrot.slane %v473_v41, 2  ;;  %v539_v57 = vrot.slane %v474_v49, 2  ;;  %v632_v37 = vmul.f32 %v3774_v23, %v3899_v29 }
  0x34   : > { %v1869_v19 = vrot.slane %v1855_v51, %v3911_v42  ;;  %v541_v59 = vrot.slane %v475_v53, 2  ;;  %v5165_v60 = vrot.slane %v3952_v55, 2  ;;  %v633_v62 = vmul.f32 %v3774_v23, %v3903_v33 }
  0x35   : > { %v540_v0 = vsel %vm513_vm3, %v538_v56, %v539_v57  ;;  %v601_v1 = vadd.f32 %v539_v57, %v442_v16  ;;  %v634_v5 = vmul.f32 %v3774_v23, %v3946_v36  ;;  %v692_v6 = vmul.f32 %v3779_v25, %v3899_v29  ;;  %v3984_v57 = vld [vmem:[%s3759_s23 + $0xb0] sm:$0xff] }
  0x36   : > { %v1870_v9 = vcombine.low %v1862_v34, %v1869_v19  ;;  %v543_v11 = vsel %vm513_vm3, %v541_v59, %v5165_v60  ;;  %v600_v17 = vadd.f32 %v540_v0, %v441_v15  ;;  %v693_v18 = vmul.f32 %v3779_v25, %v3903_v33 }
  0x37   : > { %v602_v39 = vadd.f32 %v543_v11, %v443_v47  ;;  %v661_v41 = vadd.f32 %v633_v62, %v601_v1  ;;  %v694_v16 = vmul.f32 %v3779_v25, %v3946_v36  ;;  %v3977_v8 = vmul.f32 %v3779_v25, %v3958_v58 }
  0x38   : > { %v2295_v46 = vpack.c.bf16 %v1887_v12, %v1870_v9  ;;  %v660_v49 = vadd.f32 %v632_v37, %v600_v17  ;;  %v756_v51 = vrot.slane %v692_v6, 1  ;;  %v757_v34 = vrot.slane %v693_v18, 1 }
  0x39   : > { %v662_v53 = vadd.f32 %v634_v5, %v602_v39  ;;  %v759_v56 = vrot.slane %v694_v16, 1  ;;  %v5164_v15 = vrot.slane %v3977_v8, 1  ;;  %v850_v47 = vmul.f32 %v3781_v26, %v3899_v29  ;;  %v4001_v5 = vld [vmem:[%s3759_s23 + $0xb8] sm:$0xff] }
  0x3a   : > { %3582 = vmatmul.mubr.msk.bf16.vlgmr.msra.gmra.mrb[0].mxu0 %vm2310_vm4, %v2295_v46  ;;  %v758_v19 = vsel %vm354_vm2, %v756_v51, %v757_v34  ;;  %v819_v59 = vadd.f32 %v757_v34, %v661_v41  ;;  %v851_v12 = vmul.f32 %v3781_v26, %v3903_v33  ;;  %v852_v37 = vmul.f32 %v3781_v26, %v3946_v36 }
  0x3b   : > { %v761_v62 = vsel %vm354_vm2, %v759_v56, %v5164_v15  ;;  %v818_v0 = vadd.f32 %v758_v19, %v660_v49  ;;  %v3996_v29 = vmul.f32 %v3781_v26, %v3958_v58  ;;  %v914_v1 = vrot.slane %v850_v47, 2  ;;  %3585 = vmatprep.mubr.msk.bf16.mxu0 %vm3693_vm1, %v3692_v2 }
  0x3c   : > { %v820_v6 = vadd.f32 %v761_v62, %v662_v53  ;;  %v915_v9 = vrot.slane %v851_v12, 2  ;;  %v917_v11 = vrot.slane %v852_v37, 2  ;;  %v1008_v17 = vmul.f32 %v3783_v27, %v3946_v36 }
  0x3d   : > { %v918_v18 = vrot.slane %v3996_v29, 2  ;;  %v1009_v39 = vmul.f32 %v3783_v27, %v3958_v58  ;;  %v1010_v41 = vmul.f32 %v3783_v27, %v3984_v57  ;;  %v1068_v16 = vmul.f32 %v3785_v28, %v3946_v36 }
  0x3e   : > { %v916_v46 = vsel %vm513_vm3, %v914_v1, %v915_v9  ;;  %v977_v49 = vadd.f32 %v915_v9, %v819_v59  ;;  %v1069_v51 = vmul.f32 %v3785_v28, %v3958_v58  ;;  %v1070_v34 = vmul.f32 %v3785_v28, %v3984_v57 }
  0x3f   : > { %v919_v53 = vsel %vm513_vm3, %v917_v11, %v918_v18  ;;  %v976_v56 = vadd.f32 %v916_v46, %v818_v0  ;;  %v4022_v47 = vmul.f32 %v3785_v28, %v4001_v5  ;;  %v1132_v19 = vrot.slane %v1068_v16, 1 }
  0x40   : > { %v978_v12 = vadd.f32 %v919_v53, %v820_v6  ;;  %v1037_v37 = vadd.f32 %v1009_v39, %v977_v49  ;;  %v1133_v62 = vrot.slane %v1069_v51, 1  ;;  %v1135_v59 = vrot.slane %v1070_v34, 1 }
  0x41   : > { %v1036_v1 = vadd.f32 %v1008_v17, %v976_v56  ;;  %v5169_v9 = vrot.slane %v4022_v47, 1  ;;  %v1226_v15 = vmul.f32 %v3866_v44, %v3946_v36  ;;  %v1227_v60 = vmul.f32 %v3866_v44, %v3958_v58 }
  0x42   : > { %v1038_v11 = vadd.f32 %v1010_v41, %v978_v12  ;;  %v1134_v0 = vsel %vm354_vm2, %v1132_v19, %v1133_v62  ;;  %v1195_v46 = vadd.f32 %v1133_v62, %v1037_v37  ;;  %v1228_v16 = vmul.f32 %v3866_v44, %v3984_v57 }
  0x43   : > { %v1137_v6 = vsel %vm354_vm2, %v1135_v59, %v5169_v9  ;;  %v1194_v17 = vadd.f32 %v1134_v0, %v1036_v1  ;;  %v4037_v39 = vmul.f32 %v3866_v44, %v4001_v5  ;;  %v1290_v49 = vrot.slane %v1226_v15, 2 }
  0x44   : > { %v1196_v51 = vadd.f32 %v1137_v6, %v1038_v11  ;;  %v1291_v34 = vrot.slane %v1227_v60, 2  ;;  %v1293_v53 = vrot.slane %v1228_v16, 2  ;;  %v241_v41 = vmul.f32 %v3768_v20, %v3777_v24 }
  0x45   : > { %v5167_v56 = vrot.slane %v4037_v39, 2  ;;  %v242_v19 = vmul.f32 %v3768_v20, %v3806_v45  ;;  %v302_v12 = vmul.f32 %v3770_v21, %v3806_v45  ;;  %v4048_v37 = vmul.f32 %v3770_v21, %v3811_v50 }
  0x46   : > { %v1292_v15 = vsel %vm513_vm3, %v1290_v49, %v1291_v34  ;;  %v1353_v62 = vadd.f32 %v1291_v34, %v1195_v46  ;;  %v428_v60 = vadd.f32 %v359_v43, %v241_v41  ;;  %v461_v24 = vmul.f32 %v3772_v22, %v3806_v45 }
  0x47   : > { %v1295_v59 = vsel %vm513_vm3, %v1293_v53, %v5167_v56  ;;  %v1352_v1 = vadd.f32 %v1292_v15, %v1194_v17  ;;  %v361_v11 = vrot.slane %v302_v12, 1  ;;  %v5166_v0 = vrot.slane %v4048_v37, 1  ;;  %v4093_v56 = vld [vmem:[%s3759_s23 + $0x40] sm:$0xff] }
  0x48   : > { %v4059_v16 = vadd.f32 %v1295_v59, %v1196_v51  ;;  %v1673_v6 = vcombine.high %v1353_v62, %v1353_v62  ;;  %v1680_v49 = vrot.slane %v1353_v62, %v3911_v42  ;;  %v4064_v35 = vmul.f32 %v3772_v22, %v3811_v50 }
  0x49   : > { %v1656_v43 = vcombine.high %v1352_v1, %v1352_v1  ;;  %v1663_v45 = vrot.slane %v1352_v1, %v3911_v42  ;;  %v363_v46 = vsel %vm354_vm2, %v361_v11, %v5166_v0  ;;  %v520_v17 = vrot.slane %v461_v24, 2 }
  0x4a   : > { %v1687_v34 = vrot.slane %v1673_v6, %v3911_v42  ;;  %v1688_v53 = vcombine.high %v1680_v49, %v1680_v49  ;;  %v4073_v51 = vrot.slane %v4059_v16, %v3911_v42  ;;  %v429_v41 = vadd.f32 %v363_v46, %v242_v19 }
  0x4b   : > { %v1670_v12 = vrot.slane %v1656_v43, %v3911_v42  ;;  %v1671_v15 = vcombine.high %v1663_v45, %v1663_v45  ;;  %v5168_v62 = vrot.slane %v4064_v35, 2  ;;  %v587_v59 = vadd.f32 %v518_v48, %v428_v60 }
  0x4c   : > { %v2109_v1 = vcombine.low %v1680_v49, %v1688_v53  ;;  %v2110_v24 = vcombine.low %v1687_v34, %v4073_v51  ;;  %v619_v11 = vmul.f32 %v3774_v23, %v3811_v50  ;;  %v620_v6 = vmul.f32 %v3774_v23, %v3837_v14 }
  0x4d   : > { %v1672_v19 = vcombine.high %v1670_v12, %v1670_v12  ;;  %v2092_v46 = vcombine.low %v1663_v45, %v1671_v15  ;;  %v522_v43 = vsel %vm513_vm3, %v520_v17, %v5168_v62  ;;  %v680_v40 = vmul.f32 %v3779_v25, %v3837_v14  ;;  %v4100_v62 = vld [vmem:[%s3759_s23 + $0x48] sm:$0xff] }
  0x4e   : > { %v2117_v48 = vrot.slane %v2109_v1, %v3911_v42  ;;  %v2124_v60 = vrot.slane %v2110_v24, %v3911_v42  ;;  %v588_v49 = vadd.f32 %v522_v43, %v429_v41  ;;  %v647_v34 = vadd.f32 %v619_v11, %v587_v59 }
  0x4f   : > { %v2093_v53 = vcombine.low %v1670_v12, %v1672_v19  ;;  %v2100_v0 = vrot.slane %v2092_v46, %v3911_v42  ;;  %v4097_v45 = vmul.f32 %v3779_v25, %v3852_v32  ;;  %v738_v15 = vrot.slane %v680_v40, 1 }
  0x50   : > { %v2125_v17 = vcombine.low %v2117_v48, %v2124_v60  ;;  %v648_v9 = vadd.f32 %v620_v6, %v588_v49  ;;  %v805_v1 = vadd.f32 %v736_v13, %v647_v34  ;;  %v838_v41 = vmul.f32 %v3781_v26, %v3837_v14 }
  0x51   : > { %v2107_v12 = vrot.slane %v2093_v53, %v3911_v42  ;;  %v739_v59 = vrot.slane %v4097_v45, 1  ;;  %v4110_v24 = vmul.f32 %v3781_v26, %v3852_v32  ;;  %v995_v11 = vmul.f32 %v3783_v27, %v3852_v32 }
  0x52   : > { %v896_v19 = vrot.slane %v838_v41, 2  ;;  %v963_v6 = vadd.f32 %v894_v38, %v805_v1  ;;  %v996_v3 = vmul.f32 %v3783_v27, %v4093_v56  ;;  %v1056_v13 = vmul.f32 %v3785_v28, %v4093_v56 }
  0x53   : > { %v2108_v46 = vcombine.low %v2100_v0, %v2107_v12  ;;  %v740_v43 = vsel %vm354_vm2, %v738_v15, %v739_v59  ;;  %v897_v40 = vrot.slane %v4110_v24, 2  ;;  %v4126_v48 = vmul.f32 %v3785_v28, %v4100_v62 }
  0x54   : > { %v806_v60 = vadd.f32 %v740_v43, %v648_v9  ;;  %v1023_v30 = vadd.f32 %v995_v11, %v963_v6  ;;  %v1114_v38 = vrot.slane %v1056_v13, 1  ;;  %v1214_v49 = vmul.f32 %v3866_v44, %v4093_v56 }
  0x55   : > { %v2302_v34 = vpack.c.bf16 %v2125_v17, %v2108_v46  ;;  %v898_v0 = vsel %vm513_vm3, %v896_v19, %v897_v40  ;;  %v1115_v53 = vrot.slane %v4126_v48, 1  ;;  %v4136_v15 = vmul.f32 %v3866_v44, %v4100_v62 }
  0x56   : > { %v964_v1 = vadd.f32 %v898_v0, %v806_v60  ;;  %v1181_v9 = vadd.f32 %v1112_v61, %v1023_v30  ;;  %v1272_v41 = vrot.slane %v1214_v49, 2  ;;  %v1425_v12 = vcombine.high %v3920_v52, %v3920_v52 }
  0x57   : > { %3610 = vmatmul.mubr.msk.bf16.vlgmr.msra.gmra.mrb[0].mxu1 %vm2310_vm4, %v2302_v34  ;;  %v1116_v17 = vsel %vm354_vm2, %v1114_v38, %v1115_v53  ;;  %v1273_v11 = vrot.slane %v4136_v15, 2  ;;  %v1440_v19 = vcombine.high %v3931_v63, %v3931_v63  ;;  %v257_v6 = vmul.f32 %v3768_v20, %v3903_v33 }
  0x58   : > { %v1024_v54 = vadd.f32 %v996_v3, %v964_v1  ;;  %v1339_v61 = vadd.f32 %v1270_v31, %v1181_v9  ;;  %v1439_v52 = vrot.slane %v1425_v12, %v3911_v42  ;;  %3613 = vmatprep.mubr.msk.bf16.mxu1 %vm3693_vm1, %v3692_v2  ;;  %v258_v13 = vmul.f32 %v3768_v20, %v3946_v36 }
  0x59   : > { %v1274_v46 = vsel %vm513_vm3, %v1272_v41, %v1273_v11  ;;  %v318_v63 = vmul.f32 %v3770_v21, %v3946_v36  ;;  %v4165_v33 = vmul.f32 %v3770_v21, %v3958_v58  ;;  %v444_v10 = vadd.f32 %v383_v7, %v257_v6 }
  0x5a   : > { %v1182_v31 = vadd.f32 %v1116_v17, %v1024_v54  ;;  %v1441_v3 = vcombine.high %v1439_v52, %v1439_v52  ;;  %v1442_v43 = vcombine.high %v1339_v61, %v1339_v61  ;;  %v1449_v60 = vrot.slane %v1339_v61, %v3911_v42 }
  0x5b   : > { %v1888_v30 = vcombine.low %v1440_v19, %v1439_v52  ;;  %v385_v38 = vrot.slane %v318_v63, 1  ;;  %v386_v49 = vrot.slane %v4165_v33, 1  ;;  %v477_v34 = vmul.f32 %v3772_v22, %v3946_v36 }
  0x5c   : > { %v4173_v0 = vadd.f32 %v1274_v46, %v1182_v31  ;;  %v1456_v1 = vrot.slane %v1442_v43, %v3911_v42  ;;  %v1457_v9 = vcombine.high %v1449_v60, %v1449_v60  ;;  %v1889_v41 = vcombine.low %v1441_v3, %v1449_v60 }
  0x5d   : > { %v1896_v4 = vrot.slane %v1888_v30, %v3911_v42  ;;  %v387_v7 = vsel %vm354_vm2, %v385_v38, %v386_v49  ;;  %v4182_v12 = vmul.f32 %v3772_v22, %v3958_v58  ;;  %v544_v17 = vrot.slane %v477_v34, 2  ;;  %v4198_v38 = vld [vmem:[%s3759_s23 + $0xc0] sm:$0xff] }
  0x5e   : > { %v1465_v36 = vrot.slane %v4173_v0, %v3911_v42  ;;  %v1903_v19 = vrot.slane %v1889_v41, %v3911_v42  ;;  %v1905_v6 = vcombine.low %v1457_v9, %v1456_v1  ;;  %v445_v54 = vadd.f32 %v387_v7, %v258_v13  ;;  %v4210_v9 = vld [vmem:[%s3759_s23 + $0xc8] sm:$0xff] }
  0x5f   : > { %v5171_v61 = vrot.slane %v4182_v12, 2  ;;  %v5181_v52 = vrot.slane %v3952_v55, 2  ;;  %v635_v63 = vmul.f32 %v3774_v23, %v3958_v58  ;;  %v636_v31 = vmul.f32 %v3774_v23, %v3984_v57 }
  0x60   : > { %v1473_v3 = vcombine.high %v1465_v36, %v1465_v36  ;;  %v1904_v43 = vcombine.low %v1896_v4, %v1903_v19  ;;  %v1913_v60 = vrot.slane %v1905_v6, %v3911_v42  ;;  %v696_v30 = vmul.f32 %v3779_v25, %v3984_v57 }
  0x61   : > { %v603_v46 = vadd.f32 %v5181_v52, %v444_v10  ;;  %v546_v55 = vsel %vm513_vm3, %v544_v17, %v5171_v61  ;;  %v4205_v10 = vmul.f32 %v3779_v25, %v4001_v5  ;;  %v854_v34 = vmul.f32 %v3781_v26, %v3984_v57 }
  0x62   : > { %v1906_v1 = vcombine.low %v1465_v36, %v1473_v3  ;;  %v604_v41 = vadd.f32 %v546_v55, %v445_v54  ;;  %v762_v4 = vrot.slane %v696_v30, 1  ;;  %v4214_v7 = vmul.f32 %v3781_v26, %v4001_v5 }
  0x63   : > { %v663_v13 = vadd.f32 %v635_v63, %v603_v46  ;;  %v5170_v19 = vrot.slane %v4205_v10, 1  ;;  %v5182_v17 = vrot.slane %v3977_v8, 1  ;;  %v920_v52 = vrot.slane %v854_v34, 2 }
  0x64   : > { %v1011_v46 = vmul.f32 %v3783_v27, %v4001_v5  ;;  %v1920_v63 = vrot.slane %v1906_v1, %v3911_v42  ;;  %v664_v36 = vadd.f32 %v636_v31, %v604_v41  ;;  %v921_v3 = vrot.slane %v4214_v7, 2 }
  0x65   : > { %v821_v6 = vadd.f32 %v5182_v17, %v663_v13  ;;  %v1012_v54 = vmul.f32 %v3783_v27, %v4198_v38  ;;  %v764_v30 = vsel %vm354_vm2, %v762_v4, %v5170_v19  ;;  %v1072_v55 = vmul.f32 %v3785_v28, %v4198_v38 }
  0x66   : > { %v4234_v13 = vmul.f32 %v3785_v28, %v4210_v9  ;;  %v1921_v31 = vcombine.low %v1913_v60, %v1920_v63  ;;  %v822_v34 = vadd.f32 %v764_v30, %v664_v36  ;;  %v922_v1 = vsel %vm513_vm3, %v920_v52, %v921_v3 }
  0x67   : > { %v979_v8 = vadd.f32 %v918_v18, %v821_v6  ;;  %v1230_v41 = vmul.f32 %v3866_v44, %v4198_v38  ;;  %v1138_v17 = vrot.slane %v1072_v55, 1  ;;  %v4244_v18 = vmul.f32 %v3866_v44, %v4210_v9 }
  0x68   : > { %v1139_v29 = vrot.slane %v4234_v13, 1  ;;  %v2296_v6 = vpack.c.bf16 %v1921_v31, %v1904_v43  ;;  %v980_v19 = vadd.f32 %v922_v1, %v822_v34  ;;  %v1689_v60 = vcombine.high %v4059_v16, %v4059_v16 }
  0x69   : > { %v1039_v4 = vadd.f32 %v1011_v46, %v979_v8  ;;  %v1296_v61 = vrot.slane %v1230_v41, 2  ;;  %v5183_v63 = vrot.slane %v4022_v47, 1  ;;  %v5175_v36 = vrot.slane %v4244_v18, 2 }
  0x6a   : > { %v1140_v52 = vsel %vm354_vm2, %v1138_v17, %v1139_v29  ;;  %v1704_v30 = vcombine.high %v4073_v51, %v4073_v51  ;;  %3586 = vmatmul.mubr.msk.bf16.gmra.mrb[4].mxu0 %vm2310_vm4, %v2296_v6  ;;  %v1040_v43 = vadd.f32 %v1012_v54, %v980_v19  ;;  %v1703_v8 = vrot.slane %v1689_v60, %v3911_v42 }
  0x6b   : > { %v1197_v46 = vadd.f32 %v5183_v63, %v1039_v4  ;;  %v243_v16 = vmul.f32 %v3768_v20, %v3811_v50  ;;  %v244_v55 = vmul.f32 %v3768_v20, %v3837_v14  ;;  %v1298_v47 = vsel %vm513_vm3, %v1296_v61, %v5175_v36  ;;  %3589 = vmatprep.mubr.msk.bf16.mxu0 %vm3693_vm1, %v3692_v2 }
  0x6c   : > { %v5184_v31 = vrot.slane %v4037_v39, 2  ;;  %v304_v51 = vmul.f32 %v3770_v21, %v3837_v14  ;;  %v4273_v19 = vmul.f32 %v3770_v21, %v3852_v32  ;;  %v1198_v50 = vadd.f32 %v1140_v52, %v1040_v43 }
  0x6d   : > { %v1705_v54 = vcombine.high %v1703_v8, %v1703_v8  ;;  %v2126_v1 = vcombine.low %v1704_v30, %v1703_v8  ;;  %v5185_v41 = vrot.slane %v4048_v37, 1  ;;  %v4286_v52 = vmul.f32 %v3772_v22, %v3852_v32 }
  0x6e   : > { %v1355_v34 = vadd.f32 %v5184_v31, %v1197_v46  ;;  %v364_v17 = vrot.slane %v304_v51, 1  ;;  %v5174_v6 = vrot.slane %v4273_v19, 1  ;;  %v4279_v60 = vadd.f32 %v1298_v47, %v1198_v50 }
  0x6f   : > { %v430_v4 = vadd.f32 %v5185_v41, %v243_v16  ;;  %v2134_v63 = vrot.slane %v2126_v1, %v3911_v42  ;;  %v463_v46 = vmul.f32 %v3772_v22, %v3837_v14  ;;  %v5172_v14 = vrot.slane %v4286_v52, 2 }
  0x70   : > { %v1706_v61 = vcombine.high %v1355_v34, %v1355_v34  ;;  %v1713_v39 = vrot.slane %v1355_v34, %v3911_v42  ;;  %v366_v8 = vsel %vm354_vm2, %v364_v17, %v5174_v6  ;;  %v1729_v16 = vrot.slane %v4279_v60, %v3911_v42 }
  0x71   : > { %v431_v47 = vadd.f32 %v366_v8, %v244_v55  ;;  %v523_v31 = vrot.slane %v463_v46, 2  ;;  %v5186_v50 = vrot.slane %v4064_v35, 2  ;;  %v622_v55 = vmul.f32 %v3774_v23, %v4093_v56 }
  0x72   : > { %v1720_v37 = vrot.slane %v1706_v61, %v3911_v42  ;;  %v1721_v30 = vcombine.high %v1713_v39, %v1713_v39  ;;  %v2127_v43 = vcombine.low %v1705_v54, %v1713_v39  ;;  %v621_v54 = vmul.f32 %v3774_v23, %v3852_v32 }
  0x73   : > { %v589_v1 = vadd.f32 %v5186_v50, %v430_v4  ;;  %v1737_v41 = vcombine.high %v1729_v16, %v1729_v16  ;;  %v525_v61 = vsel %vm513_vm3, %v523_v31, %v5172_v14  ;;  %v682_v39 = vmul.f32 %v3779_v25, %v4093_v56 }
  0x74   : > { %v2141_v34 = vrot.slane %v2127_v43, %v3911_v42  ;;  %v2143_v51 = vcombine.low %v1721_v30, %v1720_v37  ;;  %v4309_v37 = vld [vmem:[%s3759_s23 + $0x50] sm:$0xff]  ;;  %v590_v35 = vadd.f32 %v525_v61, %v431_v47  ;;  %v4312_v43 = vld [vmem:[%s3759_s23 + $0x58] sm:$0xff]  ;;  %v4316_v8 = vmul.f32 %v3779_v25, %v4100_v62 }
  0x75   : > { %v649_v4 = vadd.f32 %v621_v54, %v589_v1  ;;  %v2144_v30 = vcombine.low %v1729_v16, %v1737_v41  ;;  %v741_v31 = vrot.slane %v682_v39, 1  ;;  %v840_v50 = vmul.f32 %v3781_v26, %v4093_v56 }
  0x76   : > { %v2142_v17 = vcombine.low %v2134_v63, %v2141_v34  ;;  %v2151_v46 = vrot.slane %v2143_v51, %v3911_v42  ;;  %v650_v14 = vadd.f32 %v622_v55, %v590_v35  ;;  %v4324_v34 = vmul.f32 %v3781_v26, %v4100_v62 }
  0x77   : > { %v807_v63 = vadd.f32 %v739_v59, %v649_v4  ;;  %v997_v16 = vmul.f32 %v3783_v27, %v4100_v62  ;;  %v2158_v47 = vrot.slane %v2144_v30, %v3911_v42  ;;  %v5173_v51 = vrot.slane %v4316_v8, 1 }
  0x78   : > { %v899_v1 = vrot.slane %v840_v50, 2  ;;  %v998_v54 = vmul.f32 %v3783_v27, %v4309_v37  ;;  %v900_v41 = vrot.slane %v4324_v34, 2  ;;  %v1058_v59 = vmul.f32 %v3785_v28, %v4309_v37 }
  0x79   : > { %v965_v45 = vadd.f32 %v897_v40, %v807_v63  ;;  %v4339_v61 = vmul.f32 %v3785_v28, %v4312_v43  ;;  %v2159_v55 = vcombine.low %v2151_v46, %v2158_v47  ;;  %v743_v39 = vsel %vm354_vm2, %v741_v31, %v5173_v51 }
  0x7a   : > { %v1216_v35 = vmul.f32 %v3866_v44, %v4309_v37  ;;  %v4348_v4 = vmul.f32 %v3866_v44, %v4312_v43  ;;  %v808_v24 = vadd.f32 %v743_v39, %v650_v14  ;;  %v901_v40 = vsel %vm513_vm3, %v899_v1, %v900_v41 }
  0x7b   : > { %v1025_v30 = vadd.f32 %v997_v16, %v965_v45  ;;  %v1117_v50 = vrot.slane %v1058_v59, 1  ;;  %v2303_v63 = vpack.c.bf16 %v2159_v55, %v2142_v17  ;;  %v1118_v46 = vrot.slane %v4339_v61, 1 }
  0x7c   : > { %v1275_v47 = vrot.slane %v1216_v35, 2  ;;  %v1276_v31 = vrot.slane %v4348_v4, 2  ;;  %v966_v51 = vadd.f32 %v901_v40, %v808_v24  ;;  %v1458_v36 = vcombine.high %v4173_v0, %v4173_v0 }
  0x7d   : > { %v1183_v6 = vadd.f32 %v1115_v53, %v1025_v30  ;;  %v259_v14 = vmul.f32 %v3768_v20, %v3958_v58  ;;  %3614 = vmatmul.mubr.msk.bf16.gmra.mrb[4].mxu1 %vm2310_vm4, %v2303_v63  ;;  %v1119_v17 = vsel %vm354_vm2, %v1117_v50, %v1118_v46  ;;  %v260_v48 = vmul.f32 %v3768_v20, %v3984_v57 }
  0x7e   : > { %v1277_v16 = vsel %vm513_vm3, %v1275_v47, %v1276_v31  ;;  %v320_v53 = vmul.f32 %v3770_v21, %v3984_v57  ;;  %v1026_v0 = vadd.f32 %v998_v54, %v966_v51  ;;  %v1472_v1 = vrot.slane %v1458_v36, %v3911_v42  ;;  %3617 = vmatprep.mubr.msk.bf16.mxu1 %vm3693_vm1, %v3692_v2 }
  0x7f   : > { %v1341_v58 = vadd.f32 %v1273_v11, %v1183_v6  ;;  %v4379_v45 = vmul.f32 %v3770_v21, %v4001_v5  ;;  %v446_v55 = vadd.f32 %v386_v49, %v259_v14  ;;  %v479_v39 = vmul.f32 %v3772_v22, %v3984_v57 }
  0x80   : > { %v388_v59 = vrot.slane %v320_v53, 1  ;;  %v4387_v15 = vmul.f32 %v3772_v22, %v4001_v5  ;;  %v1184_v11 = vadd.f32 %v1119_v17, %v1026_v0  ;;  %v1474_v36 = vcombine.high %v1472_v1, %v1472_v1 }
  0x81   : > { %v1475_v6 = vcombine.high %v1341_v58, %v1341_v58  ;;  %v1482_v51 = vrot.slane %v1341_v58, %v3911_v42  ;;  %v389_v54 = vrot.slane %v4379_v45, 1  ;;  %v547_v35 = vrot.slane %v479_v39, 2 }
  0x82   : > { %v548_v24 = vrot.slane %v4387_v15, 2  ;;  %v5187_v33 = vrot.slane %v4182_v12, 2  ;;  %v1342_v40 = vadd.f32 %v1277_v16, %v1184_v11  ;;  %v1922_v50 = vcombine.low %v1472_v1, %v1474_v36 }
  0x83   : > { %v1489_v57 = vrot.slane %v1475_v6, %v3911_v42  ;;  %v1490_v30 = vcombine.high %v1482_v51, %v1482_v51  ;;  %v390_v63 = vsel %vm354_vm2, %v388_v59, %v389_v54  ;;  %v637_v14 = vmul.f32 %v3774_v23, %v4001_v5 }
  0x84   : > { %v605_v49 = vadd.f32 %v5187_v33, %v446_v55  ;;  %v549_v47 = vsel %vm513_vm3, %v547_v35, %v548_v24  ;;  %v638_v12 = vmul.f32 %v3774_v23, %v4198_v38  ;;  %v1491_v17 = vcombine.high %v1342_v40, %v1342_v40 }
  0x85   : > { %v1498_v16 = vrot.slane %v1342_v40, %v3911_v42  ;;  %v1923_v53 = vcombine.low %v1482_v51, %v1490_v30  ;;  %v1930_v0 = vrot.slane %v1922_v50, %v3911_v42  ;;  %v447_v58 = vadd.f32 %v390_v63, %v260_v48  ;;  %v4418_v51 = vld [vmem:[%s3759_s23 + $0xd0] sm:$0xff] }
  0x86   : > { %v665_v1 = vadd.f32 %v637_v14, %v605_v49  ;;  %v698_v59 = vmul.f32 %v3779_v25, %v4198_v38  ;;  %v4411_v55 = vmul.f32 %v3779_v25, %v4210_v9  ;;  %v4414_v39 = vrot.slane %v1491_v17, %v3911_v42  ;;  %v4426_v14 = vld [vmem:[%s3759_s23 + $0xd8] sm:$0xff] }
  0x87   : > { %v1506_v11 = vcombine.high %v1498_v16, %v1498_v16  ;;  %v1937_v36 = vrot.slane %v1923_v53, %v3911_v42  ;;  %v1939_v6 = vcombine.low %v1489_v57, %v1498_v16  ;;  %v606_v35 = vadd.f32 %v549_v47, %v447_v58 }
  0x88   : > { %v765_v48 = vrot.slane %v698_v59, 1  ;;  %v766_v33 = vrot.slane %v4411_v55, 1  ;;  %v5188_v49 = vrot.slane %v4205_v10, 1  ;;  %v856_v17 = vmul.f32 %v3781_v26, %v4198_v38 }
  0x89   : > { %v1938_v30 = vcombine.low %v1930_v0, %v1937_v36  ;;  %v1940_v50 = vcombine.low %v1506_v11, %v4414_v39  ;;  %v1947_v63 = vrot.slane %v1939_v6, %v3911_v42  ;;  %v666_v57 = vadd.f32 %v638_v12, %v606_v35 }
  0x8a   : > { %v823_v40 = vadd.f32 %v5188_v49, %v665_v1  ;;  %v767_v47 = vsel %vm354_vm2, %v765_v48, %v766_v33  ;;  %v4435_v16 = vmul.f32 %v3781_v26, %v4210_v9  ;;  %v923_v0 = vrot.slane %v856_v17, 2 }
  0x8b   : > { %v1954_v53 = vrot.slane %v1940_v50, %v3911_v42  ;;  %v1013_v58 = vmul.f32 %v3783_v27, %v4210_v9  ;;  %v1014_v12 = vmul.f32 %v3783_v27, %v4418_v51  ;;  %v824_v1 = vadd.f32 %v767_v47, %v666_v57 }
  0x8c   : > { %v981_v10 = vadd.f32 %v921_v3, %v823_v40  ;;  %v924_v59 = vrot.slane %v4435_v16, 2  ;;  %v1074_v11 = vmul.f32 %v3785_v28, %v4418_v51  ;;  %v4449_v36 = vmul.f32 %v3785_v28, %v4426_v14 }
  0x8d   : > { %v1955_v7 = vcombine.low %v1947_v63, %v1954_v53  ;;  %v1232_v6 = vmul.f32 %v3866_v44, %v4418_v51  ;;  %v4455_v35 = vmul.f32 %v3866_v44, %v4426_v14  ;;  %v1722_v50 = vcombine.high %v4279_v60, %v4279_v60 }
  0x8e   : > { %v1041_v3 = vadd.f32 %v1013_v58, %v981_v10  ;;  %v925_v48 = vsel %vm513_vm3, %v923_v0, %v924_v59  ;;  %v1141_v49 = vrot.slane %v1074_v11, 1  ;;  %v1142_v40 = vrot.slane %v4449_v36, 1 }
  0x8f   : > { %v2297_v17 = vpack.c.bf16 %v1955_v7, %v1938_v30  ;;  %v982_v63 = vadd.f32 %v925_v48, %v824_v1  ;;  %v1299_v47 = vrot.slane %v1232_v6, 2  ;;  %v5179_v10 = vrot.slane %v4455_v35, 2 }
  0x90   : > { %v1199_v57 = vadd.f32 %v1139_v29, %v1041_v3  ;;  %v1143_v44 = vsel %vm354_vm2, %v1141_v49, %v1142_v40  ;;  %v1736_v53 = vrot.slane %v1722_v50, %v3911_v42  ;;  %v245_v0 = vmul.f32 %v3768_v20, %v3852_v32 }
  0x91   : > { %3590 = vmatmul.mubr.msk.bf16.gmra.mrb[8].mxu0 %vm2310_vm4, %v2297_v17  ;;  %v1042_v60 = vadd.f32 %v1014_v12, %v982_v63  ;;  %v5189_v30 = vrot.slane %v4244_v18, 2  ;;  %v246_v13 = vmul.f32 %v3768_v20, %v4093_v56  ;;  %v306_v29 = vmul.f32 %v3770_v21, %v4093_v56 }
  0x92   : > { %v1301_v1 = vsel %vm513_vm3, %v1299_v47, %v5179_v10  ;;  %v1738_v11 = vcombine.high %v1736_v53, %v1736_v53  ;;  %3593 = vmatprep.mubr.msk.bf16.mxu0 %vm3693_vm1, %v3692_v2  ;;  %v4486_v32 = vmul.f32 %v3770_v21, %v4100_v62  ;;  %v5190_v18 = vrot.slane %v4273_v19, 1 }
  0x93   : > { %v1357_v58 = vadd.f32 %v5189_v30, %v1199_v57  ;;  %v1200_v7 = vadd.f32 %v1143_v44, %v1042_v60  ;;  %v367_v48 = vrot.slane %v306_v29, 1  ;;  %v465_v17 = vmul.f32 %v3772_v22, %v4093_v56 }
  0x94   : > { %v432_v12 = vadd.f32 %v5190_v18, %v245_v0  ;;  %v2160_v49 = vcombine.low %v1736_v53, %v1738_v11  ;;  %v5177_v50 = vrot.slane %v4486_v32, 1  ;;  %v4496_v63 = vmul.f32 %v3772_v22, %v4100_v62 }
  0x95   : > { %v1739_v3 = vcombine.high %v1357_v58, %v1357_v58  ;;  %v1746_v6 = vrot.slane %v1357_v58, %v3911_v42  ;;  %v1358_v57 = vadd.f32 %v1301_v1, %v1200_v7  ;;  %v5191_v44 = vrot.slane %v4286_v52, 2 }
  0x96   : > { %v2168_v60 = vrot.slane %v2160_v49, %v3911_v42  ;;  %v369_v53 = vsel %vm354_vm2, %v367_v48, %v5177_v50  ;;  %v526_v30 = vrot.slane %v465_v17, 2  ;;  %v5176_v56 = vrot.slane %v4496_v63, 2  ;;  %v4521_v49 = vld [vmem:[%s3759_s23 + $0x60] sm:$0xff]  ;;  %v4532_v50 = vld [vmem:[%s3759_s23 + $0x68] sm:$0xff] }
  0x97   : > { %v1753_v47 = vrot.slane %v1739_v3, %v3911_v42  ;;  %v1754_v19 = vcombine.high %v1746_v6, %v1746_v6  ;;  %v591_v0 = vadd.f32 %v5191_v44, %v432_v12  ;;  %v1755_v58 = vcombine.high %v1358_v57, %v1358_v57 }
  0x98   : > { %v1762_v29 = vrot.slane %v1358_v57, %v3911_v42  ;;  %v433_v11 = vadd.f32 %v369_v53, %v246_v13  ;;  %v528_v52 = vsel %vm513_vm3, %v526_v30, %v5176_v56  ;;  %v623_v18 = vmul.f32 %v3774_v23, %v4100_v62 }
  0x99   : > { %v2161_v1 = vcombine.low %v1746_v6, %v1754_v19  ;;  %v624_v12 = vmul.f32 %v3774_v23, %v4309_v37  ;;  %v684_v7 = vmul.f32 %v3779_v25, %v4309_v37  ;;  %v4517_v3 = vrot.slane %v1755_v58, %v3911_v42 }
  0x9a   : > { %v1770_v48 = vcombine.high %v1762_v29, %v1762_v29  ;;  %v2177_v6 = vcombine.low %v1753_v47, %v1762_v29  ;;  %v592_v17 = vadd.f32 %v528_v52, %v433_v11  ;;  %v651_v57 = vadd.f32 %v623_v18, %v591_v0 }
  0x9b   : > { %v2175_v13 = vrot.slane %v2161_v1, %v3911_v42  ;;  %v4525_v19 = vmul.f32 %v3779_v25, %v4312_v43  ;;  %v744_v44 = vrot.slane %v684_v7, 1  ;;  %v842_v58 = vmul.f32 %v3781_v26, %v4309_v37 }
  0x9c   : > { %v2178_v30 = vcombine.low %v1770_v48, %v4517_v3  ;;  %v2185_v56 = vrot.slane %v2177_v6, %v3911_v42  ;;  %v652_v47 = vadd.f32 %v624_v12, %v592_v17  ;;  %v5192_v0 = vrot.slane %v4316_v8, 1 }
  0x9d   : > { %v2176_v53 = vcombine.low %v2168_v60, %v2175_v13  ;;  %v5178_v29 = vrot.slane %v4525_v19, 1  ;;  %v4539_v11 = vmul.f32 %v3781_v26, %v4312_v43  ;;  %v902_v52 = vrot.slane %v842_v58, 2 }
  0x9e   : > { %v809_v1 = vadd.f32 %v5192_v0, %v651_v57  ;;  %v2192_v60 = vrot.slane %v2178_v30, %v3911_v42  ;;  %v999_v18 = vmul.f32 %v3783_v27, %v4312_v43  ;;  %v1000_v7 = vmul.f32 %v3783_v27, %v4521_v49  ;;  %v4561_v30 = vld [vmem:[%s5161_s1 + $0x8] ss:$0 sm:$0xff] }
  0x9f   : > { %v746_v12 = vsel %vm354_vm2, %v744_v44, %v5178_v29  ;;  %v903_v8 = vrot.slane %v4539_v11, 2  ;;  %v1060_v13 = vmul.f32 %v3785_v28, %v4521_v49  ;;  %v4556_v57 = vmul.f32 %v3785_v28, %v4532_v50 }
  0xa0   : > { %v967_v48 = vadd.f32 %v900_v41, %v809_v1  ;;  %v2193_v6 = vcombine.low %v2185_v56, %v2192_v60  ;;  %v810_v17 = vadd.f32 %v746_v12, %v652_v47  ;;  %v1218_v44 = vmul.f32 %v4561_v30, %v4521_v49 }
  0xa1   : > { %v904_v34 = vsel %vm513_vm3, %v902_v52, %v903_v8  ;;  %v1120_v58 = vrot.slane %v1060_v13, 1  ;;  %v4570_v56 = vmul.f32 %v4561_v30, %v4532_v50  ;;  %v1121_v1 = vrot.slane %v4556_v57, 1 }
  0xa2   : > { %v1027_v41 = vadd.f32 %v999_v18, %v967_v48  ;;  %v2304_v47 = vpack.c.bf16 %v2193_v6, %v2176_v53  ;;  %v968_v0 = vadd.f32 %v904_v34, %v810_v17  ;;  %v1278_v60 = vrot.slane %v1218_v44, 2 }
  0xa3   : > { %v1279_v29 = vrot.slane %v4570_v56, 2  ;;  %v1507_v10 = vcombine.high %v4414_v39, %v4414_v39  ;;  %v261_v52 = vmul.f32 %v3768_v20, %v4001_v5  ;;  %v1122_v53 = vsel %vm354_vm2, %v1120_v58, %v1121_v1 }
  0xa4   : > { %v1185_v12 = vadd.f32 %v1118_v46, %v1027_v41  ;;  %3618 = vmatmul.mubr.msk.bf16.gmra.mrb[8].mxu1 %vm2310_vm4, %v2304_v47  ;;  %v1028_v18 = vadd.f32 %v1000_v7, %v968_v0  ;;  %v262_v48 = vmul.f32 %v3768_v20, %v4198_v38  ;;  %v322_v61 = vmul.f32 %v3770_v21, %v4198_v38 }
  0xa5   : > { %v1280_v46 = vsel %vm513_vm3, %v1278_v60, %v1279_v29  ;;  %3621 = vmatprep.mubr.msk.bf16.mxu1 %vm3693_vm1, %v3692_v2  ;;  %v4597_v39 = vmul.f32 %v3770_v21, %v4210_v9  ;;  %v448_v7 = vadd.f32 %v389_v54, %v261_v52  ;;  %v481_v17 = vmul.f32 %v3772_v22, %v4198_v38 }
  0xa6   : > { %v1343_v5 = vadd.f32 %v1276_v31, %v1185_v12  ;;  %v1186_v13 = vadd.f32 %v1122_v53, %v1028_v18  ;;  %v391_v6 = vrot.slane %v322_v61, 1  ;;  %v4605_v44 = vmul.f32 %v3772_v22, %v4210_v9 }
  0xa7   : > { %v392_v34 = vrot.slane %v4597_v39, 1  ;;  %v607_v41 = vadd.f32 %v548_v24, %v448_v7  ;;  %v550_v45 = vrot.slane %v481_v17, 2  ;;  %v639_v47 = vmul.f32 %v3774_v23, %v4210_v9 }
  0xa8   : > { %v1508_v4 = vcombine.high %v1343_v5, %v1343_v5  ;;  %v1515_v31 = vrot.slane %v1343_v5, %v3911_v42  ;;  %v1344_v58 = vadd.f32 %v1280_v46, %v1186_v13  ;;  %v551_v54 = vrot.slane %v4605_v44, 2 }
  0xa9   : > { %v393_v12 = vsel %vm354_vm2, %v391_v6, %v392_v34  ;;  %v640_v46 = vmul.f32 %v3774_v23, %v4418_v51  ;;  %v4631_v17 = vmul.f32 %v3779_v25, %v4426_v14  ;;  %v311_v56 = vmul.f32 %v3770_v21, %v4532_v50 }
  0xaa   : > { %v1522_v38 = vrot.slane %v1508_v4, %v3911_v42  ;;  %v1523_v0 = vcombine.high %v1515_v31, %v1515_v31  ;;  %v1956_v60 = vcombine.low %v1507_v10, %v1515_v31  ;;  %v1524_v52 = vcombine.high %v1344_v58, %v1344_v58 }
  0xab   : > { %v1531_v18 = vrot.slane %v1344_v58, %v3911_v42  ;;  %v449_v15 = vadd.f32 %v393_v12, %v262_v48  ;;  %v552_v24 = vsel %vm513_vm3, %v550_v45, %v551_v54  ;;  %v667_v10 = vadd.f32 %v639_v47, %v607_v41  ;;  %v4638_v45 = vld [vmem:[%s3759_s23 + $0xe0] sm:$0xff] }
  0xac   : > { %v1957_v53 = vcombine.low %v1523_v0, %v1522_v38  ;;  %v1964_v61 = vrot.slane %v1956_v60, %v3911_v42  ;;  %v1538_v5 = vrot.slane %v1524_v52, %v3911_v42  ;;  %v700_v48 = vmul.f32 %v3779_v25, %v4418_v51  ;;  %v4641_v60 = vld [vmem:[%s3759_s23 + $0xe8] sm:$0xff] }
  0xad   : > { %v1539_v7 = vcombine.high %v1531_v18, %v1531_v18  ;;  %v608_v13 = vadd.f32 %v552_v24, %v449_v15  ;;  %v825_v4 = vadd.f32 %v766_v33, %v667_v10  ;;  %v858_v31 = vmul.f32 %v3781_v26, %v4418_v51 }
  0xae   : > { %v1971_v6 = vrot.slane %v1957_v53, %v3911_v42  ;;  %v1540_v41 = vcombine.high %v1538_v5, %v1538_v5  ;;  %v768_v38 = vrot.slane %v700_v48, 1  ;;  %v769_v12 = vrot.slane %v4631_v17, 1 }
  0xaf   : > { %v1973_v58 = vcombine.low %v1531_v18, %v1539_v7  ;;  %v668_v47 = vadd.f32 %v640_v46, %v608_v13  ;;  %v4646_v52 = vmul.f32 %v3781_v26, %v4426_v14  ;;  %v926_v55 = vrot.slane %v858_v31, 2 }
  0xb0   : > { %v1972_v0 = vcombine.low %v1964_v61, %v1971_v6  ;;  %v1974_v33 = vcombine.low %v1538_v5, %v1540_v41  ;;  %v983_v18 = vadd.f32 %v924_v59, %v825_v4  ;;  %v1015_v24 = vmul.f32 %v3783_v27, %v4426_v14 }
  0xb1   : > { %v1981_v15 = vrot.slane %v1973_v58, %v3911_v42  ;;  %v770_v53 = vsel %vm354_vm2, %v768_v38, %v769_v12  ;;  %v927_v61 = vrot.slane %v4646_v52, 2  ;;  %v1016_v46 = vmul.f32 %v3783_v27, %v4638_v45 }
  0xb2   : > { %v1076_v10 = vmul.f32 %v3785_v28, %v4638_v45  ;;  %v1988_v5 = vrot.slane %v1974_v33, %v3911_v42  ;;  %v826_v7 = vadd.f32 %v770_v53, %v668_v47  ;;  %v1043_v16 = vadd.f32 %v1015_v24, %v983_v18 }
  0xb3   : > { %v4664_v59 = vmul.f32 %v3785_v28, %v4641_v60  ;;  %v928_v13 = vsel %vm513_vm3, %v926_v55, %v927_v61  ;;  %v1234_v6 = vmul.f32 %v4561_v30, %v4638_v45  ;;  %v4673_v4 = vmul.f32 %v4561_v30, %v4641_v60 }
  0xb4   : > { %v1144_v48 = vrot.slane %v1076_v10, 1  ;;  %v1989_v31 = vcombine.low %v1981_v15, %v1988_v5  ;;  %v984_v41 = vadd.f32 %v928_v13, %v826_v7  ;;  %v1201_v47 = vadd.f32 %v1142_v40, %v1043_v16 }
  0xb5   : > { %v1145_v58 = vrot.slane %v4664_v59, 1  ;;  %v1302_v38 = vrot.slane %v1234_v6, 2  ;;  %v5180_v33 = vrot.slane %v4673_v4, 2  ;;  %v1771_v55 = vcombine.high %v4517_v3, %v4517_v3 }
  0xb6   : > { %v247_v18 = vmul.f32 %v3768_v20, %v4100_v62  ;;  %v2298_v24 = vpack.c.bf16 %v1989_v31, %v1972_v0  ;;  %v1044_v53 = vadd.f32 %v1016_v46, %v984_v41  ;;  %v5193_v10 = vrot.slane %v4455_v35, 2 }
  0xb7   : > { %v1146_v15 = vsel %vm354_vm2, %v1144_v48, %v1145_v58  ;;  %v1304_v36 = vsel %vm513_vm3, %v1302_v38, %v5180_v33  ;;  %v248_v40 = vmul.f32 %v3768_v20, %v4309_v37  ;;  %v249_v3 = vmul.f32 %v3768_v20, %v4312_v43 }
  0xb8   : > { %v1359_v5 = vadd.f32 %v5193_v10, %v1201_v47  ;;  %v308_v62 = vmul.f32 %v3770_v21, %v4309_v37  ;;  %3594 = vmatmul.mubr.msk.bf16.gmra.mrb[12].mxu0 %vm2310_vm4, %v2298_v24  ;;  %v1202_v0 = vadd.f32 %v1146_v15, %v1044_v53  ;;  %v309_v7 = vmul.f32 %v3770_v21, %v4312_v43 }
  0xb9   : > { %3597 = vmatprep.mubr.msk.bf16.mxu0 %vm3693_vm1, %v3692_v2  ;;  %v5194_v13 = vrot.slane %v4486_v32, 1  ;;  %v467_v6 = vmul.f32 %v3772_v22, %v4309_v37  ;;  %v468_v31 = vmul.f32 %v3772_v22, %v4312_v43  ;;  %v642_v44 = vmul.f32 %v3774_v23, %v4638_v45 }
  0xba   : > { %v1772_v46 = vcombine.high %v1359_v5, %v1359_v5  ;;  %v1779_v35 = vrot.slane %v1359_v5, %v3911_v42  ;;  %v370_v16 = vrot.slane %v308_v62, 1  ;;  %v1360_v41 = vadd.f32 %v1304_v36, %v1202_v0 }
  0xbb   : > { %v434_v48 = vadd.f32 %v5194_v13, %v247_v18  ;;  %v371_v53 = vrot.slane %v309_v7, 1  ;;  %v529_v15 = vrot.slane %v467_v6, 2  ;;  %v530_v10 = vrot.slane %v468_v31, 2 }
  0xbc   : > { %v1786_v47 = vrot.slane %v1772_v46, %v3911_v42  ;;  %v1787_v38 = vcombine.high %v1779_v35, %v1779_v35  ;;  %v2194_v24 = vcombine.low %v1771_v55, %v1779_v35  ;;  %v5195_v5 = vrot.slane %v4496_v63, 2 }
  0xbd   : > { %v1788_v33 = vcombine.high %v1360_v41, %v1360_v41  ;;  %v1795_v32 = vrot.slane %v1360_v41, %v3911_v42  ;;  %v372_v13 = vsel %vm354_vm2, %v370_v16, %v371_v53  ;;  %v436_v36 = vadd.f32 %v371_v53, %v249_v3 }
  0xbe   : > { %v593_v62 = vadd.f32 %v5195_v5, %v434_v48  ;;  %v2195_v18 = vcombine.low %v1787_v38, %v1786_v47  ;;  %v2202_v37 = vrot.slane %v2194_v24, %v3911_v42  ;;  %v531_v0 = vsel %vm513_vm3, %v529_v15, %v530_v10 }
  0xbf   : > { %v625_v55 = vmul.f32 %v3774_v23, %v4312_v43  ;;  %v1802_v46 = vrot.slane %v1788_v33, %v3911_v42  ;;  %v1803_v35 = vcombine.high %v1795_v32, %v1795_v32  ;;  %v435_v7 = vadd.f32 %v372_v13, %v248_v40  ;;  %v4725_v43 = vld [vmem:[%s3759_s23 + $0x70] sm:$0xff] }
  0xc0   : > { %v2209_v63 = vrot.slane %v2195_v18, %v3911_v42  ;;  %v595_v48 = vadd.f32 %v530_v10, %v436_v36  ;;  %v626_v6 = vmul.f32 %v3774_v23, %v4521_v49  ;;  %v627_v16 = vmul.f32 %v3774_v23, %v4532_v50 }
  0xc1   : > { %v653_v31 = vadd.f32 %v625_v55, %v593_v62  ;;  %v1804_v3 = vcombine.high %v1802_v46, %v1802_v46  ;;  %v2211_v47 = vcombine.low %v1795_v32, %v1803_v35  ;;  %v594_v38 = vadd.f32 %v531_v0, %v435_v7  ;;  %v4742_v55 = vld [vmem:[%s3759_s23 + $0x78] sm:$0xff] }
  0xc2   : > { %v2210_v41 = vcombine.low %v2202_v37, %v2209_v63  ;;  %v655_v33 = vadd.f32 %v627_v16, %v595_v48  ;;  %v686_v24 = vmul.f32 %v3779_v25, %v4521_v49  ;;  %v687_v40 = vmul.f32 %v3779_v25, %v4532_v50 }
  0xc3   : > { %v5196_v53 = vrot.slane %v4525_v19, 1  ;;  %v2212_v10 = vcombine.low %v1802_v46, %v1804_v3  ;;  %v2219_v5 = vrot.slane %v2211_v47, %v3911_v42  ;;  %v654_v62 = vadd.f32 %v626_v6, %v594_v38 }
  0xc4   : > { %v844_v32 = vmul.f32 %v3781_v26, %v4521_v49  ;;  %v747_v18 = vrot.slane %v686_v24, 1  ;;  %v748_v37 = vrot.slane %v687_v40, 1  ;;  %v845_v13 = vmul.f32 %v3781_v26, %v4532_v50 }
  0xc5   : > { %v811_v15 = vadd.f32 %v5196_v53, %v653_v31  ;;  %v2226_v0 = vrot.slane %v2212_v10, %v3911_v42  ;;  %v1001_v46 = vmul.f32 %v3783_v27, %v4532_v50  ;;  %v1002_v35 = vmul.f32 %v3783_v27, %v4725_v43 }
  0xc6   : > { %v905_v19 = vrot.slane %v844_v32, 2  ;;  %v749_v63 = vsel %vm354_vm2, %v747_v18, %v748_v37  ;;  %v813_v7 = vadd.f32 %v748_v37, %v655_v33  ;;  %v906_v48 = vrot.slane %v845_v13, 2 }
  0xc7   : > { %v969_v36 = vadd.f32 %v903_v8, %v811_v15  ;;  %v1003_v6 = vmul.f32 %v3783_v27, %v4742_v55  ;;  %v2227_v11 = vcombine.low %v2219_v5, %v2226_v0  ;;  %v812_v8 = vadd.f32 %v749_v63, %v654_v62 }
  0xc8   : > { %v1062_v31 = vmul.f32 %v3785_v28, %v4725_v43  ;;  %v907_v3 = vsel %vm513_vm3, %v905_v19, %v906_v48  ;;  %v971_v47 = vadd.f32 %v906_v48, %v813_v7  ;;  %v1063_v38 = vmul.f32 %v3785_v28, %v4742_v55 }
  0xc9   : > { %v1029_v16 = vadd.f32 %v1001_v46, %v969_v36  ;;  %v1220_v24 = vmul.f32 %v4561_v30, %v4725_v43  ;;  %v2305_v33 = vpack.c.bf16 %v2227_v11, %v2210_v41  ;;  %v970_v40 = vadd.f32 %v907_v3, %v812_v8 }
  0xca   : > { %v1123_v53 = vrot.slane %v1062_v31, 1  ;;  %v1031_v10 = vadd.f32 %v1003_v6, %v971_v47  ;;  %v1124_v5 = vrot.slane %v1063_v38, 1  ;;  %v1221_v62 = vmul.f32 %v4561_v30, %v4742_v55 }
  0xcb   : > { %v1187_v15 = vadd.f32 %v1121_v1, %v1029_v16  ;;  %v1281_v32 = vrot.slane %v1220_v24, 2  ;;  %3622 = vmatmul.mubr.msk.bf16.gmra.mrb[12].mxu1 %vm2310_vm4, %v2305_v33  ;;  %v1030_v18 = vadd.f32 %v1002_v35, %v970_v40  ;;  %v250_v41 = vmul.f32 %v3768_v20, %v4521_v49 }
  0xcc   : > { %v251_v13 = vmul.f32 %v3768_v20, %v4532_v50  ;;  %v1125_v57 = vsel %vm354_vm2, %v1123_v53, %v1124_v5  ;;  %v1189_v1 = vadd.f32 %v1124_v5, %v1031_v10  ;;  %v1282_v36 = vrot.slane %v1221_v62, 2  ;;  %3625 = vmatprep.mubr.msk.bf16.mxu1 %vm3693_vm1, %v3692_v2 }
  0xcd   : > { %v1345_v37 = vadd.f32 %v1279_v29, %v1187_v15  ;;  %v310_v0 = vmul.f32 %v3770_v21, %v4521_v49  ;;  %v1188_v19 = vadd.f32 %v1125_v57, %v1030_v18  ;;  %v469_v48 = vmul.f32 %v3772_v22, %v4521_v49 }
  0xce   : > { %v1283_v35 = vsel %vm513_vm3, %v1281_v32, %v1282_v36  ;;  %v4778_v63 = vadd.f32 %v1282_v36, %v1189_v1  ;;  %v374_v16 = vrot.slane %v311_v56, 1  ;;  %v470_v3 = vmul.f32 %v3772_v22, %v4532_v50 }
  0xcf   : > { %v1541_v46 = vcombine.high %v1345_v37, %v1345_v37  ;;  %v1548_v29 = vrot.slane %v1345_v37, %v3911_v42  ;;  %v373_v7 = vrot.slane %v310_v0, 1  ;;  %v1346_v6 = vadd.f32 %v1283_v35, %v1188_v19 }
  0xd0   : > { %v4785_v31 = vrot.slane %v4778_v63, %v3911_v42  ;;  %v532_v47 = vrot.slane %v469_v48, 2  ;;  %v628_v38 = vmul.f32 %v3774_v23, %v4725_v43  ;;  %v438_v15 = vadd.f32 %v374_v16, %v251_v13 }
  0xd1   : > { %v1555_v11 = vrot.slane %v1541_v46, %v3911_v42  ;;  %v1556_v8 = vcombine.high %v1548_v29, %v1548_v29  ;;  %v1557_v24 = vcombine.high %v1346_v6, %v1346_v6  ;;  %v1564_v33 = vrot.slane %v1346_v6, %v3911_v42 }
  0xd2   : > { %v375_v40 = vsel %vm354_vm2, %v373_v7, %v374_v16  ;;  %v533_v10 = vrot.slane %v470_v3, 2  ;;  %v629_v5 = vmul.f32 %v3774_v23, %v4742_v55  ;;  %v688_v1 = vmul.f32 %v3779_v25, %v4725_v43 }
  0xd3   : > { %v1990_v49 = vcombine.low %v1548_v29, %v1556_v8  ;;  %v437_v53 = vadd.f32 %v375_v40, %v250_v41  ;;  %v1571_v62 = vrot.slane %v1557_v24, %v3911_v42  ;;  %v1572_v32 = vcombine.high %v1564_v33, %v1564_v33 }
  0xd4   : > { %v1991_v50 = vcombine.low %v1555_v11, %v1564_v33  ;;  %v534_v37 = vsel %vm513_vm3, %v532_v47, %v533_v10  ;;  %v597_v57 = vadd.f32 %v533_v10, %v438_v15  ;;  %v689_v41 = vmul.f32 %v3779_v25, %v4742_v55 }
  0xd5   : > { %v1998_v18 = vrot.slane %v1990_v49, %v3911_v42  ;;  %v1573_v13 = vcombine.high %v1571_v62, %v1571_v62  ;;  %v2007_v0 = vcombine.low %v1572_v32, %v1571_v62  ;;  %v596_v19 = vadd.f32 %v534_v37, %v437_v53  ;;  %v4812_v49 = vld [vmem:[%s3759_s23 + $0x80] sm:$0xff]  ;;  %v4817_v53 = vld [vmem:[%s3759_s23 + $0x88] sm:$0xff] }
  0xd6   : > { %v2005_v36 = vrot.slane %v1991_v50, %v3911_v42  ;;  %v657_v46 = vadd.f32 %v629_v5, %v597_v57  ;;  %v750_v29 = vrot.slane %v688_v1, 1  ;;  %v751_v56 = vrot.slane %v689_v41, 1 }
  0xd7   : > { %v846_v35 = vmul.f32 %v3781_v26, %v4725_v43  ;;  %v2008_v48 = vcombine.low %v1573_v13, %v4785_v31  ;;  %v2015_v6 = vrot.slane %v2007_v0, %v3911_v42  ;;  %v656_v11 = vadd.f32 %v628_v38, %v596_v19 }
  0xd8   : > { %v2006_v7 = vcombine.low %v1998_v18, %v2005_v36  ;;  %v752_v8 = vsel %vm354_vm2, %v750_v29, %v751_v56  ;;  %v815_v16 = vadd.f32 %v751_v56, %v657_v46  ;;  %v847_v3 = vmul.f32 %v3781_v26, %v4742_v55 }
  0xd9   : > { %v908_v47 = vrot.slane %v846_v35, 2  ;;  %v2022_v24 = vrot.slane %v2008_v48, %v3911_v42  ;;  %v814_v33 = vadd.f32 %v752_v8, %v656_v11  ;;  %v1004_v40 = vmul.f32 %v4812_v49, %v3783_v27 }
  0xda   : > { %v1005_v38 = vmul.f32 %v4817_v53, %v3783_v27  ;;  %v909_v15 = vrot.slane %v847_v3, 2  ;;  %v1064_v10 = vmul.f32 %v4812_v49, %v3785_v28  ;;  %v1065_v5 = vmul.f32 %v4817_v53, %v3785_v28 }
  0xdb   : > { %v1222_v62 = vmul.f32 %v4812_v49, %v4561_v30  ;;  %v2023_v32 = vcombine.low %v2015_v6, %v2022_v24  ;;  %v1223_v50 = vmul.f32 %v4817_v53, %v4561_v30  ;;  %v1574_v18 = vcombine.high %v4778_v63, %v4778_v63 }
  0xdc   : > { %v1589_v37 = vcombine.high %v4785_v31, %v4785_v31  ;;  %v910_v57 = vsel %vm513_vm3, %v908_v47, %v909_v15  ;;  %v973_v1 = vadd.f32 %v909_v15, %v815_v16  ;;  %v1126_v41 = vrot.slane %v1064_v10, 1 }
  0xdd   : > { %v1127_v13 = vrot.slane %v1065_v5, 1  ;;  %v2299_v36 = vpack.c.bf16 %v2023_v32, %v2006_v7  ;;  %v972_v0 = vadd.f32 %v910_v57, %v814_v33  ;;  %v1284_v19 = vrot.slane %v1222_v62, 2 }
  0xde   : > { %v1285_v46 = vrot.slane %v1223_v50, 2  ;;  %v1033_v29 = vadd.f32 %v1005_v38, %v973_v1  ;;  %v1588_v35 = vrot.slane %v1574_v18, %v3911_v42  ;;  %v263_v63 = vmul.f32 %v3768_v20, %v4210_v9 }
  0xdf   : > { %v1128_v56 = vsel %vm354_vm2, %v1126_v41, %v1127_v13  ;;  %3598 = vmatmul.mubr.msk.bf16.gmra.mrb[16].mxu0 %vm2310_vm4, %v2299_v36  ;;  %v1032_v31 = vadd.f32 %v1004_v40, %v972_v0  ;;  %v264_v6 = vmul.f32 %v3768_v20, %v4418_v51  ;;  %v265_v7 = vmul.f32 %v3768_v20, %v4426_v14 }
  0xe0   : > { %v1286_v48 = vsel %vm513_vm3, %v1284_v19, %v1285_v46  ;;  %3601 = vmatprep.mubr.msk.bf16.mxu0 %vm3693_vm1, %v3692_v2  ;;  %v1191_v11 = vadd.f32 %v1127_v13, %v1033_v29  ;;  %v2024_v8 = vcombine.low %v1589_v37, %v1588_v35  ;;  %v324_v16 = vmul.f32 %v3770_v21, %v4418_v51 }
  0xe1   : > { %v325_v9 = vmul.f32 %v3770_v21, %v4426_v14  ;;  %v1190_v3 = vadd.f32 %v1128_v56, %v1032_v31  ;;  %v450_v47 = vadd.f32 %v392_v34, %v263_v63  ;;  %v483_v24 = vmul.f32 %v3772_v22, %v4418_v51 }
  0xe2   : > { %v484_v33 = vmul.f32 %v3772_v22, %v4426_v14  ;;  %v4856_v40 = vadd.f32 %v1285_v46, %v1191_v11  ;;  %v2032_v38 = vrot.slane %v2024_v8, %v3911_v42  ;;  %v394_v15 = vrot.slane %v324_v16, 1 }
  0xe3   : > { %v395_v10 = vrot.slane %v325_v9, 1  ;;  %v1348_v5 = vadd.f32 %v1286_v48, %v1190_v3  ;;  %v553_v62 = vrot.slane %v483_v24, 2  ;;  %v609_v50 = vadd.f32 %v551_v54, %v450_v47  ;;  %v230_v24 = vld [vmem:[%s3759_s23 + $0xf0] sm:$0xff] }
  0xe4   : > { %v554_v32 = vrot.slane %v484_v33, 2  ;;  %v1614_v39 = vrot.slane %v4856_v40, %v3911_v42  ;;  %v641_v18 = vmul.f32 %v3774_v23, %v4426_v14  ;;  %v643_v54 = vmul.f32 %v3774_v23, %v4641_v60 }
  0xe5   : > { %v396_v51 = vsel %vm354_vm2, %v394_v15, %v395_v10  ;;  %v452_v34 = vadd.f32 %v395_v10, %v265_v7  ;;  %v1590_v37 = vcombine.high %v1348_v5, %v1348_v5  ;;  %v1597_v57 = vrot.slane %v1348_v5, %v3911_v42  ;;  %v231_v10 = vld [vmem:[%s3759_s23 + $0xf8] sm:$0xff] }
  0xe6   : > { %v451_v1 = vadd.f32 %v396_v51, %v264_v6  ;;  %v555_v41 = vsel %vm513_vm3, %v553_v62, %v554_v32  ;;  %v1622_v13 = vcombine.high %v1614_v39, %v1614_v39  ;;  %v669_v14 = vadd.f32 %v641_v18, %v609_v50 }
  0xe7   : > { %v611_v36 = vadd.f32 %v554_v32, %v452_v34  ;;  %v1604_v0 = vrot.slane %v1590_v37, %v3911_v42  ;;  %v1605_v19 = vcombine.high %v1597_v57, %v1597_v57  ;;  %v702_v35 = vmul.f32 %v3779_v25, %v4638_v45 }
  0xe8   : > { %v610_v46 = vadd.f32 %v555_v41, %v451_v1  ;;  %v2042_v29 = vcombine.low %v1614_v39, %v1622_v13  ;;  %v703_v63 = vmul.f32 %v3779_v25, %v4641_v60  ;;  %v827_v7 = vadd.f32 %v769_v12, %v669_v14 }
  0xe9   : > { %v671_v56 = vadd.f32 %v643_v54, %v611_v36  ;;  %v1606_v31 = vcombine.high %v1604_v0, %v1604_v0  ;;  %v2025_v48 = vcombine.low %v1597_v57, %v1605_v19  ;;  %v771_v8 = vrot.slane %v702_v35, 1 }
  0xea   : > { %v670_v6 = vadd.f32 %v642_v44, %v610_v46  ;;  %v2056_v11 = vrot.slane %v2042_v29, %v3911_v42  ;;  %v772_v16 = vrot.slane %v703_v63, 1  ;;  %v860_v9 = vmul.f32 %v3781_v26, %v4638_v45 }
  0xeb   : > { %v2039_v3 = vrot.slane %v2025_v48, %v3911_v42  ;;  %v2041_v47 = vcombine.low %v1604_v0, %v1606_v31  ;;  %v861_v33 = vmul.f32 %v3781_v26, %v4641_v60  ;;  %v985_v15 = vadd.f32 %v927_v61, %v827_v7 }
  0xec   : > { %v773_v17 = vsel %vm354_vm2, %v771_v8, %v772_v16  ;;  %v829_v12 = vadd.f32 %v772_v16, %v671_v56  ;;  %v929_v5 = vrot.slane %v860_v9, 2  ;;  %v1017_v62 = vmul.f32 %v3783_v27, %v4641_v60 }
  0xed   : > { %v2040_v32 = vcombine.low %v2032_v38, %v2039_v3  ;;  %v2049_v45 = vrot.slane %v2041_v47, %v3911_v42  ;;  %v828_v50 = vadd.f32 %v773_v17, %v670_v6  ;;  %v930_v39 = vrot.slane %v861_v33, 2 }
  0xee   : > { %v1018_v51 = vmul.f32 %v3783_v27, %v230_v24  ;;  %v1019_v34 = vmul.f32 %v3783_v27, %v231_v10  ;;  %v1045_v18 = vadd.f32 %v1017_v62, %v985_v15  ;;  %v1078_v52 = vmul.f32 %v3785_v28, %v230_v24 }
  0xef   : > { %v2057_v61 = vcombine.low %v2049_v45, %v2056_v11  ;;  %v931_v37 = vsel %vm513_vm3, %v929_v5, %v930_v39  ;;  %v987_v57 = vadd.f32 %v930_v39, %v829_v12  ;;  %v1079_v1 = vmul.f32 %v3785_v28, %v231_v10 }
  0xf0   : > { %v986_v41 = vadd.f32 %v931_v37, %v828_v50  ;;  %v1147_v60 = vrot.slane %v1078_v52, 1  ;;  %v1203_v38 = vadd.f32 %v1145_v58, %v1045_v18  ;;  %v1236_v13 = vmul.f32 %v4561_v30, %v230_v24 }
  0xf1   : > { %v2300_v36 = vpack.c.bf16 %v2057_v61, %v2040_v32  ;;  %v1047_v44 = vadd.f32 %v1019_v34, %v987_v57  ;;  %v1148_v54 = vrot.slane %v1079_v1, 1  ;;  %v1237_v0 = vmul.f32 %v4561_v30, %v231_v10 }
  0xf2   : > { %v1046_v19 = vadd.f32 %v1018_v51, %v986_v41  ;;  %v1305_v46 = vrot.slane %v1236_v13, 2  ;;  %v5197_v14 = vrot.slane %v4673_v4, 2  ;;  %v252_v56 = vmul.f32 %v3768_v20, %v4725_v43 }
  0xf3   : > { %3602 = vmatmul.mubr.msk.bf16.gmra.mrb[20].mxu0 %vm2310_vm4, %v2300_v36  ;;  %v1149_v59 = vsel %vm354_vm2, %v1147_v60, %v1148_v54  ;;  %v1205_v58 = vadd.f32 %v1148_v54, %v1047_v44  ;;  %v1306_v35 = vrot.slane %v1237_v0, 2  ;;  %v253_v63 = vmul.f32 %v3768_v20, %v4742_v55 }
  0xf4   : > { %v1361_v29 = vadd.f32 %v5197_v14, %v1203_v38  ;;  %v1204_v31 = vadd.f32 %v1149_v59, %v1046_v19  ;;  %3605 = vmatprep.mubr.msk.bf16.mxu0 %vm3693_vm1, %v3692_v2  ;;  %v312_v4 = vmul.f32 %v3770_v21, %v4725_v43  ;;  %v313_v8 = vmul.f32 %v3770_v21, %v4742_v55 }
  0xf5   : > { %v1307_v7 = vsel %vm513_vm3, %v1305_v46, %v1306_v35  ;;  %v4916_v11 = vadd.f32 %v1306_v35, %v1205_v58  ;;  %v471_v20 = vmul.f32 %v3772_v22, %v4725_v43  ;;  %v472_v15 = vmul.f32 %v3772_v22, %v4742_v55  ;;  %v3667_v35 = vld [vmem:[%s3759_s23 + $0x90] sm:$0xff] }
  0xf6   : > { %v1805_v48 = vcombine.high %v1361_v29, %v1361_v29  ;;  %v1812_v6 = vrot.slane %v1361_v29, %v3911_v42  ;;  %v1362_v16 = vadd.f32 %v1307_v7, %v1204_v31  ;;  %v376_v47 = vrot.slane %v312_v4, 1 }
  0xf7   : > { %v4925_v24 = vrot.slane %v4916_v11, %v3911_v42  ;;  %v377_v33 = vrot.slane %v313_v8, 1  ;;  %v535_v10 = vrot.slane %v471_v20, 2  ;;  %v630_v43 = vmul.f32 %v4812_v49, %v3774_v23 }
  0xf8   : > { %v1819_v9 = vrot.slane %v1805_v48, %v3911_v42  ;;  %v1820_v3 = vcombine.high %v1812_v6, %v1812_v6  ;;  %v1821_v17 = vcombine.high %v1362_v16, %v1362_v16  ;;  %v1828_v21 = vrot.slane %v1362_v16, %v3911_v42 }
  0xf9   : > { %v378_v5 = vsel %vm354_vm2, %v376_v47, %v377_v33  ;;  %v440_v62 = vadd.f32 %v377_v33, %v253_v63  ;;  %v536_v32 = vrot.slane %v472_v15, 2  ;;  %v631_v45 = vmul.f32 %v4817_v53, %v3774_v23 }
  0xfa   : > { %v2228_v12 = vcombine.low %v1812_v6, %v1820_v3  ;;  %v1835_v50 = vrot.slane %v1821_v17, %v3911_v42  ;;  %v1836_v39 = vcombine.high %v1828_v21, %v1828_v21  ;;  %v2229_v51 = vcombine.low %v1819_v9, %v1828_v21 }
  0xfb   : > { %v439_v55 = vadd.f32 %v378_v5, %v252_v56  ;;  %v537_v34 = vsel %vm513_vm3, %v535_v10, %v536_v32  ;;  %v599_v18 = vadd.f32 %v536_v32, %v440_v62  ;;  %v690_v52 = vmul.f32 %v4812_v49, %v3779_v25  ;;  %v3666_v56 = vld [vmem:[%s3759_s23 + $0x98] sm:$0xff] }
  0xfc   : > { %v2236_v22 = vrot.slane %v2228_v12, %v3911_v42  ;;  %v1837_v61 = vcombine.high %v1835_v50, %v1835_v50  ;;  %v2243_v37 = vrot.slane %v2229_v51, %v3911_v42  ;;  %v2245_v57 = vcombine.low %v1836_v39, %v1835_v50 }
  0xfd   : > { %v691_v23 = vmul.f32 %v4817_v53, %v3779_v25  ;;  %v598_v1 = vadd.f32 %v537_v34, %v439_v55  ;;  %v659_v41 = vadd.f32 %v631_v45, %v599_v18  ;;  %v753_v60 = vrot.slane %v690_v52, 1 }
  0xfe   : > { %v848_v38 = vmul.f32 %v4812_v49, %v3781_v26  ;;  %v2246_v13 = vcombine.low %v1837_v61, %v4925_v24  ;;  %v2253_v36 = vrot.slane %v2245_v57, %v3911_v42  ;;  %v2244_v54 = vcombine.low %v2236_v22, %v2243_v37 }
  0xff   : > { %v754_v44 = vrot.slane %v691_v23, 1  ;;  %v658_v0 = vadd.f32 %v630_v43, %v598_v1  ;;  %v849_v19 = vmul.f32 %v4817_v53, %v3781_v26  ;;  %v1007_v59 = vmul.f32 %v3666_v56, %v3783_v27 }
 0x100   : > { %v911_v46 = vrot.slane %v848_v38, 2  ;;  %v2260_v25 = vrot.slane %v2246_v13, %v3911_v42  ;;  %v1066_v63 = vmul.f32 %v3667_v35, %v3785_v28  ;;  %v1067_v31 = vmul.f32 %v3666_v56, %v3785_v28 }
 0x101   : > { %v755_v14 = vsel %vm354_vm2, %v753_v60, %v754_v44  ;;  %v817_v29 = vadd.f32 %v754_v44, %v659_v41  ;;  %v912_v58 = vrot.slane %v849_v19, 2  ;;  %v1006_v6 = vmul.f32 %v3667_v35, %v3783_v27 }
 0x102   : > { %v816_v49 = vadd.f32 %v755_v14, %v658_v0  ;;  %v2261_v48 = vcombine.low %v2253_v36, %v2260_v25  ;;  %v1224_v26 = vmul.f32 %v3667_v35, %v4561_v30  ;;  %v1225_v53 = vmul.f32 %v3666_v56, %v4561_v30 }
 0x103   : > { %v913_v4 = vsel %vm513_vm3, %v911_v46, %v912_v58  ;;  %v975_v7 = vadd.f32 %v912_v58, %v817_v29  ;;  %v1129_v8 = vrot.slane %v1066_v63, 1  ;;  %v1130_v20 = vrot.slane %v1067_v31, 1 }
 0x104   : > { %v2306_v16 = vpack.c.bf16 %v2261_v48, %v2244_v54  ;;  %v974_v9 = vadd.f32 %v913_v4, %v816_v49  ;;  %v1287_v3 = vrot.slane %v1224_v26, 2  ;;  %v1288_v47 = vrot.slane %v1225_v53, 2 }
 0x105   : > { %v1035_v33 = vadd.f32 %v1007_v59, %v975_v7  ;;  %v1131_v15 = vsel %vm354_vm2, %v1129_v8, %v1130_v20  ;;  %v1838_v28 = vcombine.high %v4916_v11, %v4916_v11  ;;  %v1607_v30 = vcombine.high %v4856_v40, %v4856_v40 }
 0x106   : > { %3626 = vmatmul.mubr.msk.bf16.gmra.mrb[16].mxu1 %vm2310_vm4, %v2306_v16  ;;  %v1034_v27 = vadd.f32 %v1006_v6, %v974_v9  ;;  %v1853_v10 = vcombine.high %v4925_v24, %v4925_v24  ;;  %v1289_v21 = vsel %vm513_vm3, %v1287_v3, %v1288_v47 }
 0x107   : > { %3629 = vmatprep.mubr.msk.bf16.mxu1 %vm3693_vm1, %v3692_v2  ;;  %v1193_v17 = vadd.f32 %v1130_v20, %v1035_v33  ;;  %v1852_v12 = vrot.slane %v1838_v28, %v3911_v42  ;;  %v1621_v32 = vrot.slane %v1607_v30, %v3911_v42 }
 0x108   : > { %v1192_v43 = vadd.f32 %v1131_v15, %v1034_v27 }
 0x109   : > { %v1351_v5 = vadd.f32 %v1288_v47, %v1193_v17  ;;  %v2262_v11 = vcombine.low %v1853_v10, %v1852_v12 }
 0x10a   : > { %v1350_v62 = vadd.f32 %v1289_v21, %v1192_v43 }
 0x10b   : > { %v1640_v45 = vcombine.high %v1351_v5, %v1351_v5  ;;  %v1647_v40 = vrot.slane %v1351_v5, %v3911_v42  ;;  %v2269_v50 = vrot.slane %v2262_v11, %v3911_v42 }
 0x10c   : > { %v1623_v24 = vcombine.high %v1350_v62, %v1350_v62  ;;  %v1630_v39 = vrot.slane %v1350_v62, %v3911_v42 }
 0x10d   : > { %v1654_v2 = vrot.slane %v1640_v45, %v3911_v42  ;;  %v1655_v51 = vcombine.high %v1647_v40, %v1647_v40  ;;  %v2307_v22 = vpack.c.bf16 %v2269_v50, %v2269_v50  ;;  %v2388_v1 = vpop.f32.mrb[0].mxu0 }
 0x10e   : > { %v1637_v55 = vrot.slane %v1623_v24, %v3911_v42  ;;  %v1638_v34 = vcombine.high %v1630_v39, %v1630_v39  ;;  %v2058_v18 = vcombine.low %v1621_v32, %v1630_v39  ;;  %v2515_v38 = vcombine.high %v2388_v1, %v2388_v1  ;;  %v3583_v36 = vpop.f32.mrb[1].mxu0 }
 0x10f   : > { %v2076_v52 = vcombine.low %v1655_v51, %v1654_v2  ;;  %3630 = vmatmul.mubr.msk.bf16.gmra.mrb[20].mxu1 %vm2310_vm4, %v2307_v22  ;;  %v2522_v13 = vrot.slane %v2388_v1, %v3911_v42  ;;  %v2391_v44 = vpop.f32.mrb[2].mxu0 }
 0x110   : > { %v1639_v61 = vcombine.high %v1637_v55, %v1637_v55  ;;  %v2059_v37 = vcombine.low %v1638_v34, %v1637_v55  ;;  %v2066_v57 = vrot.slane %v2058_v18, %v3911_v42  ;;  %v2529_v19 = vrot.slane %v2515_v38, %v3911_v42  ;;  %v3584_v25 = vpop.f32.mrb[3].mxu0 }
 0x111   : > { %v2090_v23 = vrot.slane %v2076_v52, %v3911_v42  ;;  %v2530_v46 = vcombine.high %v2522_v13, %v2522_v13  ;;  %v2532_v14 = vcombine.high %v2391_v44, %v2391_v44  ;;  %v2539_v29 = vrot.slane %v2391_v44, %v3911_v42 }
 0x112   : > { %v2073_v41 = vrot.slane %v2059_v37, %v3911_v42  ;;  %v2075_v60 = vcombine.low %v1639_v61, %v1647_v40  ;;  %v2531_v59 = vcombine.high %v2529_v19, %v2529_v19 }
 0x113   : > { %v2931_v49 = vcombine.low %v2522_v13, %v2530_v46  ;;  %v2546_v58 = vrot.slane %v2532_v14, %v3911_v42  ;;  %v2547_v35 = vcombine.high %v2539_v29, %v2539_v29 }
 0x114   : > { %v2074_v54 = vcombine.low %v2066_v57, %v2073_v41  ;;  %v2083_v0 = vrot.slane %v2075_v60, %v3911_v42  ;;  %v2932_v31 = vcombine.low %v2529_v19, %v2531_v59 }
 0x115   : > { %v2948_v48 = vcombine.low %v2539_v29, %v2547_v35  ;;  %v2939_v6 = vrot.slane %v2931_v49, %v3911_v42  ;;  %v2962_v4 = vrot.slane %v2546_v58, %v3911_v42  ;;  %v2548_v39 = vcombine.high %v2546_v58, %v2546_v58 }
 0x116   : > { %v2091_v56 = vcombine.low %v2083_v0, %v2090_v23  ;;  %v2946_v26 = vrot.slane %v2932_v31, %v3911_v42 }
 0x117   : > { %v2955_v53 = vrot.slane %v2948_v48, %v3911_v42 }
 0x118   : > { %v2301_v63 = vpack.c.bf16 %v2091_v56, %v2074_v54  ;;  %v2947_v7 = vcombine.low %v2939_v6, %v2946_v26 }
 0x119   : > { %v2963_v8 = vcombine.low %v2955_v53, %v2962_v4 }
 0x11a   : > { %3606 = vmatmul.mubr.msk.bf16.gmra.mrb[24].mxu0 %vm2310_vm4, %v2301_v63  ;;  %3422 = vst.msk [vmem:[%s4994_s4] sm:$0xff] %vm3421_vm5, %v2947_v7 }
 0x11b   : > { %3424 = vst.msk [vmem:[%s4994_s4 + $0x8] sm:$0x3f] %vm3423_vm6, %v2963_v8 }
 0x12a   : > { %v2444_v20 = vpop.f32.mrb[0].mxu1 }
 0x12b   : > { %v2753_v16 = vcombine.high %v2444_v20, %v2444_v20  ;;  %v2760_v9 = vrot.slane %v2444_v20, %v3911_v42  ;;  %v3611_v3 = vpop.f32.mrb[1].mxu1 }
 0x12c   : > { %v2447_v47 = vpop.f32.mrb[2].mxu1 }
 0x12d   : > { %v2767_v33 = vrot.slane %v2753_v16, %v3911_v42  ;;  %v2768_v15 = vcombine.high %v2760_v9, %v2760_v9  ;;  %v2770_v28 = vcombine.high %v2447_v47, %v2447_v47  ;;  %v2777_v27 = vrot.slane %v2447_v47, %v3911_v42  ;;  %v3612_v30 = vpop.f32.mrb[3].mxu1 }
 0x12f   : > { %v2769_v10 = vcombine.high %v2767_v33, %v2767_v33  ;;  %v3195_v17 = vcombine.low %v2760_v9, %v2768_v15  ;;  %v2784_v21 = vrot.slane %v2770_v28, %v3911_v42  ;;  %v2785_v12 = vcombine.high %v2777_v27, %v2777_v27 }
 0x131   : > { %v3196_v43 = vcombine.low %v2767_v33, %v2769_v10  ;;  %v3203_v5 = vrot.slane %v3195_v17, %v3911_v42  ;;  %v3212_v11 = vcombine.low %v2777_v27, %v2785_v12  ;;  %v3226_v62 = vrot.slane %v2784_v21, %v3911_v42 }
 0x132   : > { %v2786_v0 = vcombine.high %v2784_v21, %v2784_v21 }
 0x133   : > { %v3210_v32 = vrot.slane %v3196_v43, %v3911_v42  ;;  %v3219_v45 = vrot.slane %v3212_v11, %v3911_v42 }
 0x135   : > { %v3211_v40 = vcombine.low %v3203_v5, %v3210_v32  ;;  %v3227_v50 = vcombine.low %v3219_v45, %v3226_v62 }
 0x137   : > { %3439 = vst.msk [vmem:[%s4994_s4 + $0x80] sm:$0xff] %vm3421_vm5, %v3211_v40 }
 0x138   : > { %3440 = vst.msk [vmem:[%s4994_s4 + $0x88] sm:$0x3f] %vm3423_vm6, %v3227_v50 }
 0x13d   : > { %v2396_v24 = vpop.f32.mrb[4].mxu0 }
 0x13e   : > { %v2549_v2 = vcombine.high %v2396_v24, %v2396_v24  ;;  %v2556_v51 = vrot.slane %v2396_v24, %v3911_v42  ;;  %v3587_v22 = vpop.f32.mrb[5].mxu0 }
 0x13f   : > { %v2399_v55 = vpop.f32.mrb[6].mxu0 }
 0x140   : > { %v2563_v34 = vrot.slane %v2549_v2, %v3911_v42  ;;  %v2564_v18 = vcombine.high %v2556_v51, %v2556_v51  ;;  %v2964_v52 = vcombine.low %v2548_v39, %v2556_v51  ;;  %v3588_v61 = vpop.f32.mrb[7].mxu0  ;;  %v2573_v37 = vrot.slane %v2399_v55, %v3911_v42 }
 0x141   : > { %v2566_v20 = vcombine.high %v2399_v55, %v2399_v55 }
 0x142   : > { %v2965_v57 = vcombine.low %v2564_v18, %v2563_v34  ;;  %v2565_v23 = vcombine.high %v2563_v34, %v2563_v34  ;;  %v2581_v1 = vcombine.high %v2573_v37, %v2573_v37  ;;  %v2972_v41 = vrot.slane %v2964_v52, %v3911_v42 }
 0x143   : > { %v2580_v9 = vrot.slane %v2566_v20, %v3911_v42 }
 0x144   : > { %v2979_v60 = vrot.slane %v2965_v57, %v3911_v42  ;;  %v2981_v38 = vcombine.low %v2565_v23, %v2573_v37  ;;  %v2995_v44 = vrot.slane %v2581_v1, %v3911_v42 }
 0x145   : > { %v2582_v3 = vcombine.high %v2580_v9, %v2580_v9 }
 0x146   : > { %v2980_v13 = vcombine.low %v2972_v41, %v2979_v60  ;;  %v2988_v36 = vrot.slane %v2981_v38, %v3911_v42 }
 0x147   : > { %v2997_v30 = vcombine.low %v2580_v9, %v2582_v3 }
 0x148   : > { %3425 = vst.msk [vmem:[%s4994_s4 + $0x10] sm:$0xff] %vm3421_vm5, %v2980_v13  ;;  %v2996_v54 = vcombine.low %v2988_v36, %v2995_v44 }
 0x149   : > { %v3005_v11 = vrot.slane %v2997_v30, %v3911_v42 }
 0x14a   : > { %3426 = vst.msk [vmem:[%s4994_s4 + $0x18] sm:$0x3f] %vm3423_vm6, %v2996_v54 }
 0x150   : > { %v2452_v19 = vpop.f32.mrb[4].mxu1 }
 0x151   : > { %v2787_v46 = vcombine.high %v2452_v19, %v2452_v19  ;;  %v2794_v25 = vrot.slane %v2452_v19, %v3911_v42  ;;  %v3615_v14 = vpop.f32.mrb[5].mxu1 }
 0x152   : > { %v2455_v29 = vpop.f32.mrb[6].mxu1 }
 0x153   : > { %v2801_v56 = vrot.slane %v2787_v46, %v3911_v42  ;;  %v2802_v59 = vcombine.high %v2794_v25, %v2794_v25  ;;  %v3228_v49 = vcombine.low %v2786_v0, %v2794_v25  ;;  %v3616_v58 = vpop.f32.mrb[7].mxu1  ;;  %v2811_v35 = vrot.slane %v2455_v29, %v3911_v42 }
 0x154   : > { %v2804_v45 = vcombine.high %v2455_v29, %v2455_v29 }
 0x155   : > { %v3229_v63 = vcombine.low %v2802_v59, %v2801_v56  ;;  %v3236_v31 = vrot.slane %v3228_v49, %v3911_v42  ;;  %v2803_v48 = vcombine.high %v2801_v56, %v2801_v56  ;;  %v2819_v6 = vcombine.high %v2811_v35, %v2811_v35 }
 0x156   : > { %v2818_v2 = vrot.slane %v2804_v45, %v3911_v42 }
 0x157   : > { %v3243_v26 = vrot.slane %v3229_v63, %v3911_v42  ;;  %v3245_v53 = vcombine.low %v2803_v48, %v2811_v35  ;;  %v3259_v4 = vrot.slane %v2819_v6, %v3911_v42 }
 0x158   : > { %v2820_v51 = vcombine.high %v2818_v2, %v2818_v2 }
 0x159   : > { %v3244_v7 = vcombine.low %v3236_v31, %v3243_v26  ;;  %v3252_v8 = vrot.slane %v3245_v53, %v3911_v42 }
 0x15a   : > { %v3261_v55 = vcombine.low %v2818_v2, %v2820_v51 }
 0x15b   : > { %3441 = vst.msk [vmem:[%s4994_s4 + $0x90] sm:$0xff] %vm3421_vm5, %v3244_v7  ;;  %v3260_v16 = vcombine.low %v3252_v8, %v3259_v4 }
 0x15c   : > { %v3269_v41 = vrot.slane %v3261_v55, %v3911_v42 }
 0x15d   : > { %3442 = vst.msk [vmem:[%s4994_s4 + $0x98] sm:$0x3f] %vm3423_vm6, %v3260_v16 }
 0x164   : > { %v2404_v47 = vpop.f32.mrb[8].mxu0 }
 0x165   : > { %v2583_v33 = vcombine.high %v2404_v47, %v2404_v47  ;;  %v2590_v15 = vrot.slane %v2404_v47, %v3911_v42  ;;  %v3591_v28 = vpop.f32.mrb[9].mxu0 }
 0x166   : > { %v2407_v27 = vpop.f32.mrb[10].mxu0 }
 0x167   : > { %v2597_v10 = vrot.slane %v2583_v33, %v3911_v42  ;;  %v2598_v17 = vcombine.high %v2590_v15, %v2590_v15  ;;  %v3592_v21 = vpop.f32.mrb[11].mxu0  ;;  %v2607_v5 = vrot.slane %v2407_v27, %v3911_v42  ;;  %v2600_v46 = vcombine.high %v2407_v27, %v2407_v27 }
 0x169   : > { %v2599_v12 = vcombine.high %v2597_v10, %v2597_v10  ;;  %v2998_v43 = vcombine.low %v2590_v15, %v2598_v17  ;;  %v3028_v24 = vrot.slane %v2607_v5, %v3911_v42  ;;  %v2614_v25 = vrot.slane %v2600_v46, %v3911_v42 }
 0x16a   : > { %v2615_v14 = vcombine.high %v2607_v5, %v2607_v5 }
 0x16b   : > { %v3012_v62 = vrot.slane %v2998_v43, %v3911_v42  ;;  %v3014_v32 = vcombine.low %v2597_v10, %v2599_v12  ;;  %v2616_v59 = vcombine.high %v2614_v25, %v2614_v25 }
 0x16c   : > { %v3030_v29 = vcombine.low %v2615_v14, %v2614_v25 }
 0x16d   : > { %v3013_v40 = vcombine.low %v3005_v11, %v3012_v62  ;;  %v3021_v50 = vrot.slane %v3014_v32, %v3911_v42 }
 0x16e   : > { %v3038_v4 = vrot.slane %v3030_v29, %v3911_v42 }
 0x16f   : > { %3427 = vst.msk [vmem:[%s4994_s4 + $0x20] sm:$0xff] %vm3421_vm5, %v3013_v40  ;;  %v3029_v39 = vcombine.low %v3021_v50, %v3028_v24 }
 0x171   : > { %3428 = vst.msk [vmem:[%s4994_s4 + $0x28] sm:$0x3f] %vm3423_vm6, %v3029_v39 }
 0x177   : > { %v2460_v22 = vpop.f32.mrb[8].mxu1 }
 0x178   : > { %v2821_v34 = vcombine.high %v2460_v22, %v2460_v22  ;;  %v2828_v18 = vrot.slane %v2460_v22, %v3911_v42  ;;  %v3619_v52 = vpop.f32.mrb[9].mxu1 }
 0x179   : > { %v2463_v61 = vpop.f32.mrb[10].mxu1 }
 0x17a   : > { %v2835_v37 = vrot.slane %v2821_v34, %v3911_v42  ;;  %v2836_v57 = vcombine.high %v2828_v18, %v2828_v18  ;;  %v2845_v23 = vrot.slane %v2463_v61, %v3911_v42  ;;  %v3620_v1 = vpop.f32.mrb[11].mxu1  ;;  %v2838_v17 = vcombine.high %v2463_v61, %v2463_v61 }
 0x17c   : > { %v2837_v60 = vcombine.high %v2835_v37, %v2835_v37  ;;  %v3262_v38 = vcombine.low %v2828_v18, %v2836_v57  ;;  %v3292_v44 = vrot.slane %v2845_v23, %v3911_v42  ;;  %v2853_v43 = vcombine.high %v2845_v23, %v2845_v23 }
 0x17d   : > { %v2852_v11 = vrot.slane %v2838_v17, %v3911_v42 }
 0x17e   : > { %v3276_v13 = vrot.slane %v3262_v38, %v3911_v42  ;;  %v3278_v36 = vcombine.low %v2835_v37, %v2837_v60 }
 0x17f   : > { %v3294_v62 = vcombine.low %v2853_v43, %v2852_v11  ;;  %v2854_v32 = vcombine.high %v2852_v11, %v2852_v11 }
 0x180   : > { %v3277_v54 = vcombine.low %v3269_v41, %v3276_v13  ;;  %v3285_v0 = vrot.slane %v3278_v36, %v3911_v42 }
 0x181   : > { %v3302_v39 = vrot.slane %v3294_v62, %v3911_v42 }
 0x182   : > { %3443 = vst.msk [vmem:[%s4994_s4 + $0xa0] sm:$0xff] %vm3421_vm5, %v3277_v54  ;;  %v3293_v19 = vcombine.low %v3285_v0, %v3292_v44 }
 0x184   : > { %3444 = vst.msk [vmem:[%s4994_s4 + $0xa8] sm:$0x3f] %vm3423_vm6, %v3293_v19 }
 0x18b   : > { %v2412_v56 = vpop.f32.mrb[12].mxu0 }
 0x18c   : > { %v2617_v49 = vcombine.high %v2412_v56, %v2412_v56  ;;  %v2624_v58 = vrot.slane %v2412_v56, %v3911_v42  ;;  %v3595_v35 = vpop.f32.mrb[13].mxu0 }
 0x18d   : > { %v2415_v63 = vpop.f32.mrb[14].mxu0 }
 0x18e   : > { %v2631_v31 = vrot.slane %v2617_v49, %v3911_v42  ;;  %v2632_v48 = vcombine.high %v2624_v58, %v2624_v58  ;;  %v3031_v6 = vcombine.low %v2616_v59, %v2624_v58  ;;  %v2634_v26 = vcombine.high %v2415_v63, %v2415_v63  ;;  %v3596_v53 = vpop.f32.mrb[15].mxu0 }
 0x18f   : > { %v2641_v7 = vrot.slane %v2415_v63, %v3911_v42 }
 0x190   : > { %v2633_v8 = vcombine.high %v2631_v31, %v2631_v31  ;;  %v3045_v20 = vrot.slane %v3031_v6, %v3911_v42  ;;  %v3047_v16 = vcombine.low %v2632_v48, %v2631_v31  ;;  %v2648_v9 = vrot.slane %v2634_v26, %v3911_v42 }
 0x191   : > { %v2649_v3 = vcombine.high %v2641_v7, %v2641_v7 }
 0x192   : > { %v3046_v47 = vcombine.low %v3038_v4, %v3045_v20  ;;  %v3054_v33 = vrot.slane %v3047_v16, %v3911_v42  ;;  %v3061_v15 = vrot.slane %v2633_v8, %v3911_v42  ;;  %v2650_v28 = vcombine.high %v2648_v9, %v2648_v9 }
 0x193   : > { %v3063_v27 = vcombine.low %v2641_v7, %v2649_v3 }
 0x194   : > { %v3062_v30 = vcombine.low %v3054_v33, %v3061_v15  ;;  %3429 = vst.msk [vmem:[%s4994_s4 + $0x30] sm:$0xff] %vm3421_vm5, %v3046_v47  ;;  %v3064_v10 = vcombine.low %v2648_v9, %v2650_v28 }
 0x195   : > { %v3071_v21 = vrot.slane %v3063_v27, %v3911_v42 }
 0x196   : > { %3430 = vst.msk [vmem:[%s4994_s4 + $0x38] sm:$0x3f] %vm3423_vm6, %v3062_v30  ;;  %v3078_v12 = vrot.slane %v3064_v10, %v3911_v42 }
 0x198   : > { %v3079_v5 = vcombine.low %v3071_v21, %v3078_v12 }
 0x19a   : > { %3431 = vst.msk [vmem:[%s4994_s4 + $0x40] sm:$0xff] %vm3421_vm5, %v3079_v5 }
 0x19e   : > { %v2468_v45 = vpop.f32.mrb[12].mxu1 }
 0x19f   : > { %v2855_v40 = vcombine.high %v2468_v45, %v2468_v45  ;;  %v2862_v50 = vrot.slane %v2468_v45, %v3911_v42  ;;  %v3623_v24 = vpop.f32.mrb[13].mxu1 }
 0x1a0   : > { %v2471_v2 = vpop.f32.mrb[14].mxu1 }
 0x1a1   : > { %v2869_v51 = vrot.slane %v2855_v40, %v3911_v42  ;;  %v2870_v22 = vcombine.high %v2862_v50, %v2862_v50  ;;  %v3295_v55 = vcombine.low %v2854_v32, %v2862_v50  ;;  %v2872_v34 = vcombine.high %v2471_v2, %v2471_v2  ;;  %v3624_v18 = vpop.f32.mrb[15].mxu1 }
 0x1a2   : > { %v2879_v52 = vrot.slane %v2471_v2, %v3911_v42 }
 0x1a3   : > { %v2871_v61 = vcombine.high %v2869_v51, %v2869_v51  ;;  %v3309_v37 = vrot.slane %v3295_v55, %v3911_v42  ;;  %v3311_v57 = vcombine.low %v2870_v22, %v2869_v51  ;;  %v2886_v23 = vrot.slane %v2872_v34, %v3911_v42 }
 0x1a4   : > { %v2887_v1 = vcombine.high %v2879_v52, %v2879_v52 }
 0x1a5   : > { %v3310_v41 = vcombine.low %v3302_v39, %v3309_v37  ;;  %v3318_v60 = vrot.slane %v3311_v57, %v3911_v42  ;;  %v3325_v38 = vrot.slane %v2871_v61, %v3911_v42  ;;  %v2888_v13 = vcombine.high %v2886_v23, %v2886_v23 }
 0x1a6   : > { %v3327_v36 = vcombine.low %v2879_v52, %v2887_v1 }
 0x1a7   : > { %v3326_v44 = vcombine.low %v3318_v60, %v3325_v38  ;;  %3445 = vst.msk [vmem:[%s4994_s4 + $0xb0] sm:$0xff] %vm3421_vm5, %v3310_v41  ;;  %v3328_v54 = vcombine.low %v2886_v23, %v2888_v13 }
 0x1a8   : > { %v3335_v0 = vrot.slane %v3327_v36, %v3911_v42 }
 0x1a9   : > { %3446 = vst.msk [vmem:[%s4994_s4 + $0xb8] sm:$0x3f] %vm3423_vm6, %v3326_v44  ;;  %v3342_v19 = vrot.slane %v3328_v54, %v3911_v42 }
 0x1ab   : > { %v3343_v46 = vcombine.low %v3335_v0, %v3342_v19 }
 0x1ad   : > { %3447 = vst.msk [vmem:[%s4994_s4 + $0xc0] sm:$0xff] %vm3421_vm5, %v3343_v46 }
 0x1b2   : > { %v2420_v25 = vpop.f32.mrb[16].mxu0 }
 0x1b3   : > { %v2651_v14 = vcombine.high %v2420_v25, %v2420_v25  ;;  %v2658_v29 = vrot.slane %v2420_v25, %v3911_v42  ;;  %v3599_v56 = vpop.f32.mrb[17].mxu0 }
 0x1b4   : > { %v2423_v59 = vpop.f32.mrb[18].mxu0 }
 0x1b5   : > { %v2665_v49 = vrot.slane %v2651_v14, %v3911_v42  ;;  %v2666_v58 = vcombine.high %v2658_v29, %v2658_v29  ;;  %v2668_v35 = vcombine.high %v2423_v59, %v2423_v59  ;;  %v2675_v63 = vrot.slane %v2423_v59, %v3911_v42  ;;  %v3600_v31 = vpop.f32.mrb[19].mxu0 }
 0x1b7   : > { %v3080_v48 = vcombine.low %v2658_v29, %v2666_v58  ;;  %v2667_v6 = vcombine.high %v2665_v49, %v2665_v49  ;;  %v2682_v26 = vrot.slane %v2668_v35, %v3911_v42  ;;  %v2683_v53 = vcombine.high %v2675_v63, %v2675_v63 }
 0x1b8   : > { %v3094_v7 = vrot.slane %v2665_v49, %v3911_v42 }
 0x1b9   : > { %v3087_v4 = vrot.slane %v3080_v48, %v3911_v42  ;;  %v3096_v8 = vcombine.low %v2667_v6, %v2675_v63  ;;  %v3097_v20 = vcombine.low %v2683_v53, %v2682_v26  ;;  %v2684_v15 = vcombine.high %v2682_v26, %v2682_v26 }
 0x1bb   : > { %v3095_v16 = vcombine.low %v3087_v4, %v3094_v7  ;;  %v3104_v9 = vrot.slane %v3096_v8, %v3911_v42  ;;  %v3111_v3 = vrot.slane %v3097_v20, %v3911_v42 }
 0x1bd   : > { %3432 = vst.msk [vmem:[%s4994_s4 + $0x48] sm:$0x3f] %vm3423_vm6, %v3095_v16  ;;  %v3112_v47 = vcombine.low %v3104_v9, %v3111_v3 }
 0x1bf   : > { %3433 = vst.msk [vmem:[%s4994_s4 + $0x50] sm:$0xff] %vm3421_vm5, %v3112_v47 }
 0x1c6   : > { %v2428_v33 = vpop.f32.mrb[20].mxu0 }
 0x1c7   : > { %v2685_v28 = vcombine.high %v2428_v33, %v2428_v33  ;;  %v2692_v27 = vrot.slane %v2428_v33, %v3911_v42  ;;  %v3603_v30 = vpop.f32.mrb[21].mxu0 }
 0x1c8   : > { %v2431_v10 = vpop.f32.mrb[22].mxu0 }
 0x1c9   : > { %v2699_v17 = vrot.slane %v2685_v28, %v3911_v42  ;;  %v2700_v21 = vcombine.high %v2692_v27, %v2692_v27  ;;  %v3113_v12 = vcombine.low %v2684_v15, %v2692_v27  ;;  %v3604_v43 = vpop.f32.mrb[23].mxu0  ;;  %v2709_v5 = vrot.slane %v2431_v10, %v3911_v42 }
 0x1ca   : > { %v2702_v41 = vcombine.high %v2431_v10, %v2431_v10 }
 0x1cb   : > { %v2701_v11 = vcombine.high %v2699_v17, %v2699_v17  ;;  %v3120_v62 = vrot.slane %v3113_v12, %v3911_v42  ;;  %v3127_v32 = vrot.slane %v2700_v21, %v3911_v42  ;;  %v2717_v45 = vcombine.high %v2709_v5, %v2709_v5 }
 0x1cc   : > { %v2716_v14 = vrot.slane %v2702_v41, %v3911_v42 }
 0x1cd   : > { %v3128_v40 = vcombine.low %v3120_v62, %v3127_v32  ;;  %v3129_v50 = vcombine.low %v2699_v17, %v2701_v11  ;;  %v3130_v24 = vcombine.low %v2709_v5, %v2717_v45 }
 0x1ce   : > { %v2718_v26 = vcombine.high %v2716_v14, %v2716_v14 }
 0x1cf   : > { %v3137_v39 = vrot.slane %v3129_v50, %v3911_v42  ;;  %3434 = vst.msk [vmem:[%s4994_s4 + $0x58] sm:$0x3f] %vm3423_vm6, %v3128_v40  ;;  %v3144_v2 = vrot.slane %v3130_v24, %v3911_v42 }
 0x1d0   : > { %v3146_v8 = vcombine.low %v2716_v14, %v2718_v26 }
 0x1d1   : > { %v3145_v51 = vcombine.low %v3137_v39, %v3144_v2 }
 0x1d2   : > { %v3153_v3 = vrot.slane %v3146_v8, %v3911_v42 }
 0x1d3   : > { %3435 = vst.msk [vmem:[%s4994_s4 + $0x60] sm:$0xff] %vm3421_vm5, %v3145_v51 }
 0x1d9   : > { %v2476_v22 = vpop.f32.mrb[16].mxu1 }
 0x1da   : > { %v2889_v55 = vcombine.high %v2476_v22, %v2476_v22  ;;  %v2896_v34 = vrot.slane %v2476_v22, %v3911_v42  ;;  %v3627_v18 = vpop.f32.mrb[17].mxu1 }
 0x1db   : > { %v2479_v52 = vpop.f32.mrb[18].mxu1 }
 0x1dc   : > { %v2903_v61 = vrot.slane %v2889_v55, %v3911_v42  ;;  %v2904_v37 = vcombine.high %v2896_v34, %v2896_v34  ;;  %v2906_v57 = vcombine.high %v2479_v52, %v2479_v52  ;;  %v2913_v23 = vrot.slane %v2479_v52, %v3911_v42  ;;  %v3628_v1 = vpop.f32.mrb[19].mxu1 }
 0x1de   : > { %v3344_v60 = vcombine.low %v2896_v34, %v2904_v37  ;;  %v3358_v38 = vrot.slane %v2903_v61, %v3911_v42  ;;  %v2905_v13 = vcombine.high %v2903_v61, %v2903_v61  ;;  %v2920_v36 = vrot.slane %v2906_v57, %v3911_v42 }
 0x1df   : > { %v2921_v44 = vcombine.high %v2913_v23, %v2913_v23 }
 0x1e0   : > { %v3351_v54 = vrot.slane %v3344_v60, %v3911_v42  ;;  %v3360_v0 = vcombine.low %v2905_v13, %v2913_v23  ;;  %v2922_v46 = vcombine.high %v2920_v36, %v2920_v36 }
 0x1e1   : > { %v3361_v19 = vcombine.low %v2921_v44, %v2920_v36 }
 0x1e2   : > { %v3359_v25 = vcombine.low %v3351_v54, %v3358_v38  ;;  %v3368_v29 = vrot.slane %v3360_v0, %v3911_v42  ;;  %v2484_v56 = vpop.f32.mrb[20].mxu1 }
 0x1e3   : > { %v3375_v59 = vrot.slane %v3361_v19, %v3911_v42  ;;  %v2929_v49 = vrot.slane %v2484_v56, %v3911_v42  ;;  %v3631_v58 = vpop.f32.mrb[21].mxu1 }
 0x1e4   : > { %3448 = vst.msk [vmem:[%s4994_s4 + $0xc8] sm:$0x3f] %vm3423_vm6, %v3359_v25  ;;  %v2487_v35 = vpop.f32.mrb[22].mxu1 }
 0x1e5   : > { %v3376_v63 = vcombine.low %v3368_v29, %v3375_v59  ;;  %v2930_v31 = vcombine.high %v2929_v49, %v2929_v49  ;;  %v3377_v48 = vcombine.low %v2922_v46, %v2929_v49  ;;  %v3632_v6 = vpop.f32.mrb[23].mxu1 }
 0x1e7   : > { %3449 = vst.msk [vmem:[%s4994_s4 + $0xd0] sm:$0xff] %vm3421_vm5, %v3376_v63  ;;  %v3384_v53 = vrot.slane %v3377_v48, %v3911_v42  ;;  %v3391_v4 = vrot.slane %v2930_v31, %v3911_v42 }
 0x1e9   : > { %v3392_v7 = vcombine.low %v3384_v53, %v3391_v4 }
 0x1eb   : > { %3450 = vst.msk [vmem:[%s4994_s4 + $0xd8] sm:$0x3f] %vm3423_vm6, %v3392_v7 }
 0x1ed   : > { %v2436_v20 = vpop.f32.mrb[24].mxu0 }
 0x1ee   : > { %v2719_v16 = vcombine.high %v2436_v20, %v2436_v20  ;;  %v2726_v9 = vrot.slane %v2436_v20, %v3911_v42  ;;  %v3607_v47 = vpop.f32.mrb[25].mxu0 }
 0x1ef   : > { %v2439_v33 = vpop.f32.mrb[26].mxu0 }
 0x1f0   : > { %v2733_v15 = vrot.slane %v2719_v16, %v3911_v42  ;;  %v2734_v28 = vcombine.high %v2726_v9, %v2726_v9  ;;  %v3160_v27 = vrot.slane %v2726_v9, %v3911_v42  ;;  %v2736_v30 = vcombine.high %v2439_v33, %v2439_v33  ;;  %v3608_v10 = vpop.f32.mrb[27].mxu0 }
 0x1f1   : > { %v2743_v17 = vrot.slane %v2439_v33, %v3911_v42 }
 0x1f2   : > { %v3161_v21 = vcombine.low %v3153_v3, %v3160_v27  ;;  %v3162_v12 = vcombine.low %v2734_v28, %v2733_v15  ;;  %v2735_v43 = vcombine.high %v2733_v15, %v2733_v15  ;;  %v2750_v5 = vrot.slane %v2736_v30, %v3911_v42 }
 0x1f3   : > { %v2751_v11 = vcombine.high %v2743_v17, %v2743_v17 }
 0x1f4   : > { %3436 = vst.msk [vmem:[%s4994_s4 + $0x68] sm:$0x3f] %vm3423_vm6, %v3161_v21  ;;  %v2752_v62 = vcombine.high %v2750_v5, %v2750_v5  ;;  %v3163_v32 = vcombine.low %v2735_v43, %v2743_v17  ;;  %v3170_v40 = vrot.slane %v3162_v12, %v3911_v42 }
 0x1f5   : > { %v3179_v45 = vcombine.low %v2751_v11, %v2750_v5 }
 0x1f6   : > { %v3177_v50 = vrot.slane %v3163_v32, %v3911_v42  ;;  %v3193_v24 = vrot.slane %v2752_v62, %v3911_v42 }
 0x1f7   : > { %v3186_v39 = vrot.slane %v3179_v45, %v3911_v42 }
 0x1f8   : > { %v3178_v2 = vcombine.low %v3170_v40, %v3177_v50 }
 0x1f9   : > { %v3194_v51 = vcombine.low %v3186_v39, %v3193_v24 }
 0x1fa   : > { %3437 = vst.msk [vmem:[%s4994_s4 + $0x70] sm:$0xff] %vm3421_vm5, %v3178_v2 }
 0x1fb   : > { %3438 = vst.msk [vmem:[%s4994_s4 + $0x78] sm:$0x3f] %vm3423_vm6, %v3194_v51 }
 0x1fc PF: > { %s13_s14 = sadd.s32 1, %s3690_s14   ;;  %s5198_s12 = smov %s3686_s13 }
 0x1fd   : > { %p10_p5 = scmp.ge.s32.totalorder %s13_s14, 4   ;;  %s5199_s13 = smov %s5201_s15 }
 0x1ff   :  { %12 = sbr.rel (!%p10_p5) target bundleno = 2 (0x2), region = 63 }

</bundles_post_ra>
